<compile_context>
chip_gen: v7x
topology: tpu7x:2x2x1
jax: 0.10.0
libtpu: 0.0.40
codegen_flags: <defaults>
</compile_context>

<pallas_src>
import math

import jax
import jax.numpy as jnp
from jax import lax
from jax.experimental import pallas as pl
from jax.experimental.pallas import tpu as pltpu


def _signal_sample_kernel(x_ref, w1_ref, b1_ref, w2_ref, b2_ref,
                          w3_ref, b3_ref, o_ref):
    # In-kernel f32 -> bf16 cast: VPU work hidden under the MXU, no separate
    # XLA pad/cast pass over x in HBM.
    x = x_ref[...].astype(jnp.bfloat16)
    # hidden1 + ReLU  (bf16 x bf16 -> f32 accumulate on the MXU)
    h1 = jnp.dot(x, w1_ref[...], preferred_element_type=jnp.float32)
    h1 = jnp.maximum(h1 + b1_ref[...], 0.0)
    # hidden2 + ReLU
    h2 = jnp.dot(h1.astype(jnp.bfloat16), w2_ref[...],
                 preferred_element_type=jnp.float32)
    h2 = jnp.maximum(h2 + b2_ref[...], 0.0)                        # (TM, 32) f32
    # output_layer (32 -> 1): contract the 32-axis directly; the result lands
    # lane-dense as (1, TM) with no transpose / relayout.
    o = lax.dot_general(w3_ref[...], h2,
                        dimension_numbers=(((1,), (1,)), ((), ())),
                        preferred_element_type=jnp.float32)        # (1, TM)
    o_ref[...] = (o + b3_ref[0]).astype(o_ref.dtype)


def _round_up(n, m):
    return ((n + m - 1) // m) * m


def signal_sample_forward(x, params, *, tm=2048):
    """x: [batch, 768] float32 -> [batch, 1] float32."""
    w1, b1, w2, b2, w3, b3 = params
    M, K = x.shape

    # Batch tile: large default to amortize per-grid-step overhead; shrink
    # only for tiny batches (keep it a multiple of 128 so the lane-dense
    # output block stays aligned).  When the batch is big enough, make sure
    # the grid has at least 2 steps so both v7x TensorCores get work.
    tm = min(tm, _round_up(max(M, 1), 128))
    if M > 256 and pl.cdiv(M, tm) < 2:
        tm = max(128, _round_up(pl.cdiv(M, 2), 128))
    grid = (pl.cdiv(M, tm),)
    m_out = grid[0] * tm

    def pinned(a):
        # Whole array as one block, resident across the batch grid.  A single
        # buffer: constant index_map means the block is never re-fetched.
        return pl.BlockSpec(a.shape, lambda i: (0,) * a.ndim,
                            pipeline_mode=pl.Buffered(1))

    out = pl.pallas_call(
        _signal_sample_kernel,
        out_shape=jax.ShapeDtypeStruct((1, m_out), jnp.float32),
        grid=grid,
        in_specs=[
            pl.BlockSpec((tm, K), lambda i: (i, 0)),                 # x tile (f32)
            pinned(w1), pinned(b1),                                  # hidden1
            pinned(w2), pinned(b2),                                  # hidden2
            pinned(w3),                                              # output w (1,32)
            pl.BlockSpec(memory_space=pltpu.MemorySpace.SMEM),       # b3 scalar
        ],
        out_specs=pl.BlockSpec((1, tm), lambda i: (0, i)),           # lane-dense
        compiler_params=pltpu.CompilerParams(
            dimension_semantics=("parallel",),
            vmem_limit_bytes=48 * 1024 * 1024),
    )(x, w1, b1, w2, b2, w3, b3)

    return out[0, :M].reshape(M, 1)


def init_params(key, input_size=768, hidden=512, output_size=32):
    """Deterministic init matching the PyTorch module's init schemes.

    Hidden-layer weights are returned transposed to (in, out) and pre-cast to
    bfloat16; the output-layer weight is a (1, 32) f32 row; biases are f32.
    """
    k1, k2, k3, kb1, kb2, kb3 = jax.random.split(key, 6)

    def kaiming_uniform(k, fan_in, fan_out):
        # gain=sqrt(2) for relu -> bound = sqrt(6 / fan_in)
        bound = math.sqrt(6.0 / fan_in)
        return jax.random.uniform(k, (fan_in, fan_out), jnp.float32,
                                  minval=-bound, maxval=bound)

    def xavier_uniform(k, fan_in, fan_out, shape):
        bound = math.sqrt(6.0 / (fan_in + fan_out))
        return jax.random.uniform(k, shape, jnp.float32,
                                  minval=-bound, maxval=bound)

    def linear_bias(k, fan_in, shape):
        # PyTorch default Linear bias init: U(-1/sqrt(fan_in), 1/sqrt(fan_in))
        bound = 1.0 / math.sqrt(fan_in)
        return jax.random.uniform(k, shape, jnp.float32,
                                  minval=-bound, maxval=bound)

    w1 = kaiming_uniform(k1, input_size, hidden).astype(jnp.bfloat16)
    b1 = linear_bias(kb1, input_size, (1, hidden))
    w2 = kaiming_uniform(k2, hidden, output_size).astype(jnp.bfloat16)
    b2 = linear_bias(kb2, hidden, (1, output_size))
    w3 = xavier_uniform(k3, output_size, 1, (1, output_size))   # (1, 32) f32 row
    b3 = linear_bias(kb3, output_size, (1,))                    # scalar (SMEM)
    return (w1, b1, w2, b2, w3, b3)


def reference_forward(x, params):
    """Pure-JAX reference using the same bf16-quantized weights/activations."""
    w1, b1, w2, b2, w3, b3 = params
    xq = x.astype(jnp.bfloat16).astype(jnp.float32)
    h1 = jnp.maximum(
        jnp.dot(xq, w1.astype(jnp.float32), precision="highest") + b1, 0.0)
    h1q = h1.astype(jnp.bfloat16).astype(jnp.float32)
    h2 = jnp.maximum(
        jnp.dot(h1q, w2.astype(jnp.float32), precision="highest") + b2, 0.0)
    return h2 @ w3.T + b3[0]


if __name__ == "__main__":
    key = jax.random.PRNGKey(0)
    kx, kp = jax.random.split(key)

    batch = 8
    input_size, hidden, output_size = 768, 512, 32

    x = jax.random.normal(kx, (batch, input_size), jnp.float32)
    params = init_params(kp, input_size, hidden, output_size)

    out = jax.block_until_ready(signal_sample_forward(x, params))
    ref = reference_forward(x, params)

    assert out.shape == (batch, 1), out.shape
    assert jnp.allclose(out, ref, atol=5e-3, rtol=5e-3), "mismatch vs reference"

    print("KERNEL_OK")
</pallas_src>

<mosaic_0001>
module attributes {stable_mosaic.version = 11 : i64} {
  func.func @_signal_sample_kernel(%arg0: i32, %arg1: memref<128x768xf32, #tpu.memory_space<vmem>>, %arg2: memref<768x512xbf16, #tpu.memory_space<vmem>>, %arg3: memref<1x512xf32, #tpu.memory_space<vmem>>, %arg4: memref<512x32xbf16, #tpu.memory_space<vmem>>, %arg5: memref<1x32xf32, #tpu.memory_space<vmem>>, %arg6: memref<1x32xf32, #tpu.memory_space<vmem>>, %arg7: memref<1xf32, #tpu.memory_space<smem>>, %arg8: memref<1x128xf32, #tpu.memory_space<vmem>>) attributes {dimension_semantics = [#tpu.dimension_semantics<parallel>], iteration_bounds = array<i64: 1>, scalar_prefetch = 0 : i64, scratch_operands = 0 : i64, tpu.core_type = #tpu.core_type<tc>, window_params = [{transform_indices = @transform_0, window_bounds = array<i64: 128, 768>}, {pipeline_mode = #tpu.pipeline_mode<synchronous>, transform_indices = @transform_1, window_bounds = array<i64: 768, 512>}, {pipeline_mode = #tpu.pipeline_mode<synchronous>, transform_indices = @transform_2, window_bounds = array<i64: 1, 512>}, {pipeline_mode = #tpu.pipeline_mode<synchronous>, transform_indices = @transform_3, window_bounds = array<i64: 512, 32>}, {pipeline_mode = #tpu.pipeline_mode<synchronous>, transform_indices = @transform_4, window_bounds = array<i64: 1, 32>}, {pipeline_mode = #tpu.pipeline_mode<synchronous>, transform_indices = @transform_5, window_bounds = array<i64: 1, 32>}, {transform_indices = @transform_6, window_bounds = array<i64: 1>}, {transform_indices = @transform_7, window_bounds = array<i64: 1, 128>}]} {
    %c0 = arith.constant 0 : index
    %c0_0 = arith.constant 0 : index
    %0 = vector.load %arg1[%c0, %c0_0] : memref<128x768xf32, #tpu.memory_space<vmem>>, vector<128x768xf32>
    %1 = arith.truncf %0 : vector<128x768xf32> to vector<128x768xbf16>
    %c0_1 = arith.constant 0 : index
    %c0_2 = arith.constant 0 : index
    %2 = vector.load %arg2[%c0_1, %c0_2] : memref<768x512xbf16, #tpu.memory_space<vmem>>, vector<768x512xbf16>
    %cst = arith.constant dense<0.000000e+00> : vector<128x512xf32>
    %3 = tpu.matmul %1, %2, %cst {dimension_numbers = #tpu.dot_dimension_numbers<[1], [0], [0], [1], [0, 0, 1, 1], [], []>} : vector<128x768xbf16>, vector<768x512xbf16>, vector<128x512xf32> -> vector<128x512xf32>
    %c0_3 = arith.constant 0 : index
    %c0_4 = arith.constant 0 : index
    %4 = vector.load %arg3[%c0_3, %c0_4] : memref<1x512xf32, #tpu.memory_space<vmem>>, vector<1x512xf32>
    %5 = vector.broadcast %4 : vector<1x512xf32> to vector<128x512xf32>
    %6 = arith.addf %3, %5 : vector<128x512xf32>
    %cst_5 = arith.constant 0.000000e+00 : f32
    %7 = vector.broadcast %cst_5 : f32 to vector<128x512xf32>
    %8 = arith.maximumf %6, %7 : vector<128x512xf32>
    %9 = arith.truncf %8 : vector<128x512xf32> to vector<128x512xbf16>
    %c0_6 = arith.constant 0 : index
    %c0_7 = arith.constant 0 : index
    %10 = vector.load %arg4[%c0_6, %c0_7] : memref<512x32xbf16, #tpu.memory_space<vmem>>, vector<512x32xbf16>
    %cst_8 = arith.constant dense<0.000000e+00> : vector<128x32xf32>
    %11 = tpu.matmul %9, %10, %cst_8 {dimension_numbers = #tpu.dot_dimension_numbers<[1], [0], [0], [1], [0, 0, 1, 1], [], []>} : vector<128x512xbf16>, vector<512x32xbf16>, vector<128x32xf32> -> vector<128x32xf32>
    %c0_9 = arith.constant 0 : index
    %c0_10 = arith.constant 0 : index
    %12 = vector.load %arg5[%c0_9, %c0_10] : memref<1x32xf32, #tpu.memory_space<vmem>>, vector<1x32xf32>
    %13 = vector.broadcast %12 : vector<1x32xf32> to vector<128x32xf32>
    %14 = arith.addf %11, %13 : vector<128x32xf32>
    %cst_11 = arith.constant 0.000000e+00 : f32
    %15 = vector.broadcast %cst_11 : f32 to vector<128x32xf32>
    %16 = arith.maximumf %14, %15 : vector<128x32xf32>
    %c0_12 = arith.constant 0 : index
    %c0_13 = arith.constant 0 : index
    %17 = vector.load %arg6[%c0_12, %c0_13] : memref<1x32xf32, #tpu.memory_space<vmem>>, vector<1x32xf32>
    %cst_14 = arith.constant dense<0.000000e+00> : vector<1x128xf32>
    %18 = tpu.matmul %17, %16, %cst_14 {dimension_numbers = #tpu.dot_dimension_numbers<[1], [1], [0], [0], [0, 0, 1, 0], [], []>} : vector<1x32xf32>, vector<128x32xf32>, vector<1x128xf32> -> vector<1x128xf32>
    %c0_15 = arith.constant 0 : index
    %19 = memref.load %arg7[%c0_15] : memref<1xf32, #tpu.memory_space<smem>>
    %20 = vector.broadcast %19 : f32 to vector<1x128xf32>
    %21 = arith.addf %18, %20 : vector<1x128xf32>
    %c0_16 = arith.constant 0 : index
    %c0_17 = arith.constant 0 : index
    %22 = vector.load %arg8[%c0_16, %c0_17] : memref<1x128xf32, #tpu.memory_space<vmem>>, vector<1x128xf32>
    tpu.vector_store %arg8[%c0_16, %c0_17], %21 {strides = array<i32>} : memref<1x128xf32, #tpu.memory_space<vmem>>, vector<1x128xf32>,
    return
  }
  func.func @transform_0(%arg0: i32) -> (i32, i32) {
    %c0_i32 = arith.constant 0 : i32
    %c0_i32_0 = arith.constant 0 : i32
    return %arg0, %c0_i32 : i32, i32
  }
  func.func @transform_1(%arg0: i32) -> (i32, i32) {
    %c0_i32 = arith.constant 0 : i32
    %c0_i32_0 = arith.constant 0 : i32
    %c0_i32_1 = arith.constant 0 : i32
    return %c0_i32, %c0_i32_0 : i32, i32
  }
  func.func @transform_2(%arg0: i32) -> (i32, i32) {
    %c0_i32 = arith.constant 0 : i32
    %c0_i32_0 = arith.constant 0 : i32
    %c0_i32_1 = arith.constant 0 : i32
    return %c0_i32, %c0_i32_0 : i32, i32
  }
  func.func @transform_3(%arg0: i32) -> (i32, i32) {
    %c0_i32 = arith.constant 0 : i32
    %c0_i32_0 = arith.constant 0 : i32
    %c0_i32_1 = arith.constant 0 : i32
    return %c0_i32, %c0_i32_0 : i32, i32
  }
  func.func @transform_4(%arg0: i32) -> (i32, i32) {
    %c0_i32 = arith.constant 0 : i32
    %c0_i32_0 = arith.constant 0 : i32
    %c0_i32_1 = arith.constant 0 : i32
    return %c0_i32, %c0_i32_0 : i32, i32
  }
  func.func @transform_5(%arg0: i32) -> (i32, i32) {
    %c0_i32 = arith.constant 0 : i32
    %c0_i32_0 = arith.constant 0 : i32
    %c0_i32_1 = arith.constant 0 : i32
    return %c0_i32, %c0_i32_0 : i32, i32
  }
  func.func @transform_6(%arg0: i32) -> i32 {
    %c0_i32 = arith.constant 0 : i32
    %c0_i32_0 = arith.constant 0 : i32
    return %c0_i32 : i32
  }
  func.func @transform_7(%arg0: i32) -> (i32, i32) {
    %c0_i32 = arith.constant 0 : i32
    %c0_i32_0 = arith.constant 0 : i32
    return %c0_i32, %arg0 : i32, i32
  }
}

</mosaic_0001>

<bundles_post_ra>
// kernel: tpu_custom_call.1
= control target key start
LH: loop header
LB: loop body
LE: loop exit
PB: predicated region body
PF: predicated region fallthrough
CT: control target
= control target key end

     0   :  { %13 = vsyncpa [#allocation4], 0  ;;  %s4358_s0 = inlined_call_operand.vmem [shape: f32[8,768], index: 0, kind: input, shape index: {}]   ;;  %s4359_s1 = inlined_call_operand.hbm [shape: bf16[768,512], index: 1, kind: input, shape index: {}]   ;;  %s4360_s2 = inlined_call_operand.vmem [shape: f32[1,512], index: 2, kind: input, shape index: {}]   ;;  %s4361_s3 = inlined_call_operand.vmem [shape: bf16[512,32], index: 3, kind: input, shape index: {}]   ;;  %s4362_s4 = inlined_call_operand.vmem [shape: f32[1,32], index: 4, kind: input, shape index: {}]   ;;  %s4363_s5 = inlined_call_operand.vmem [shape: f32[1,32], index: 5, kind: input, shape index: {}]   ;;  %s4364_s6 = inlined_call_operand.<no memory space> [shape: f32[1], index: 6, kind: input, shape index: {}]   ;;  %s4365_s7 = inlined_call_operand.hbm [shape: f32[1,128], index: 7, kind: output, shape index: {}]  }
   0x1   :  { %14 = vsyncpa [#allocation5], 0  ;;  %s3770_s24 = smov [#allocation3]   ;;  %s3722_s28 = scalar_lea.hbm %s4359_s1, 24576 }
   0x2   :  { %s22_s25 = sshll.u32 %s3770_s24, 4  ;;  %p3723_p0 = scmp.ne.s32.totalorder %s4359_s1, %s3722_s28  ;;  %s23_s25 = int_to_ptr.vmem [resolvable:$true] %s22_s25 }
   0x3   :  { %p3726_p1 = scmp.lt.u32.totalorder %s3722_s28, %s4359_s1 }
   0x5   :  { %p3728_p2 = pnand %p3726_p1, %p3723_p0 }
   0x7   :  { %3731 = shalt.err (!%p3728_p2)
}
   0x8   :  { %s3732_s10 = scalar_lea.vmem %s23_s25, 24576  ;;  %p3737_p4 = scmp.lt.s32.totalorder %s23_s25, %s23_s25 }
   0x9   :  { %p3733_p3 = scmp.ne.s32.totalorder %s23_s25, %s3732_s10  ;;  %p3738_p5 = scmp.lt.s32.totalorder %s3732_s10, %s3732_s10 }
   0xb   :  { %p3739_p6 = por %p3738_p5, %p3737_p4 }
   0xd   :  { %p3740_p7 = pnand %p3739_p6, %p3733_p3 }
   0xf   :  { %3743 = shalt.err (!%p3740_p7)
}
  0x10   :  { %s3771_s11 = smov 256   ;;  %s3772_s12 = smov 16  }
  0x11   :  { %28 = dma.hbm_to_vmem [thread:$0]  %s4359_s1, 24576, %s23_s25, [#allocation4], %s3771_s11, %s3771_s11, %s3772_s12  }
  0x12   :  { %3766 = dma.done.wait [#allocation4], 24576  }
  0x13   :  { %3767 = vsyncadd [#allocation4], 4294942720  ;;  %v3402_v0 = vld [vmem:[#allocation3 + $0x4] ss:$16 sps:$4 sm:$0xff]   ;;  %v3404_v1 = vld [vmem:[#allocation3 + $0xc] ss:$16 sps:$4 sm:$0xff]  }
  0x14   :  { %1361 = vmatprep.subr.bf16.mxu0 %v3402_v0  ;;  %v3406_v2 = vld [vmem:[#allocation3] ss:$16 sps:$4 sm:$0xff]   ;;  %v3407_v3 = vld [vmem:[#allocation3 + $0x8] ss:$16 sps:$4 sm:$0xff]   ;;  %1700 = vmatprep.subr.bf16.mxu1 %v3404_v1  ;;  %v3408_v4 = vld [vmem:[#allocation3 + $0x24] ss:$16 sps:$4 sm:$0xff]  }
  0x15   :  { %1362 = vmatpush1.bf16.msra.mxu0 %v3406_v2  ;;  %1701 = vmatpush1.bf16.msra.mxu1 %v3407_v3  ;;  %v3410_v5 = vld [vmem:[#allocation3 + $0x2c] ss:$16 sps:$4 sm:$0xff]   ;;  %v3412_v6 = vld [vmem:[#allocation3 + $0x20] ss:$16 sps:$4 sm:$0xff]   ;;  %v3413_v7 = vld [vmem:[#allocation3 + $0x28] ss:$16 sps:$4 sm:$0xff]  }
  0x16   :  { %1363 = vmatprep.subr.bf16.mxu0 %v3408_v4  ;;  %1702 = vmatprep.subr.bf16.mxu1 %v3410_v5  ;;  %v3414_v8 = vld [vmem:[#allocation3 + $0x44] ss:$16 sps:$4 sm:$0xff]   ;;  %v3416_v9 = vld [vmem:[#allocation3 + $0x4c] ss:$16 sps:$4 sm:$0xff]   ;;  %v3418_v10 = vld [vmem:[#allocation3 + $0x40] ss:$16 sps:$4 sm:$0xff]  }
  0x17   :  { %v3419_v11 = vld [vmem:[#allocation3 + $0x48] ss:$16 sps:$4 sm:$0xff]   ;;  %v3420_v12 = vld [vmem:[#allocation3 + $0x64] ss:$16 sps:$4 sm:$0xff]   ;;  %v3422_v13 = vld [vmem:[#allocation3 + $0x6c] ss:$16 sps:$4 sm:$0xff]  }
  0x18   :  { %v3424_v14 = vld [vmem:[#allocation3 + $0x60] ss:$16 sps:$4 sm:$0xff]   ;;  %v3425_v15 = vld [vmem:[#allocation3 + $0x68] ss:$16 sps:$4 sm:$0xff]   ;;  %v3426_v16 = vld [vmem:[#allocation3 + $0x84] ss:$16 sps:$4 sm:$0xff]  }
  0x19   :  { %1364 = vmatpush1.bf16.msra.mxu0 %v3412_v6  ;;  %1703 = vmatpush1.bf16.msra.mxu1 %v3413_v7  ;;  %v3428_v17 = vld [vmem:[#allocation3 + $0x8c] ss:$16 sps:$4 sm:$0xff]   ;;  %v3430_v18 = vld [vmem:[#allocation3 + $0x80] ss:$16 sps:$4 sm:$0xff]   ;;  %v3431_v19 = vld [vmem:[#allocation3 + $0x88] ss:$16 sps:$4 sm:$0xff]  }
  0x1a   :  { %1365 = vmatprep.subr.bf16.mxu0 %v3414_v8  ;;  %1704 = vmatprep.subr.bf16.mxu1 %v3416_v9  ;;  %v3432_v20 = vld [vmem:[#allocation3 + $0xa4] ss:$16 sps:$4 sm:$0xff]   ;;  %v3434_v21 = vld [vmem:[#allocation3 + $0xac] ss:$16 sps:$4 sm:$0xff]   ;;  %v3436_v22 = vld [vmem:[#allocation3 + $0xa0] ss:$16 sps:$4 sm:$0xff]  }
  0x1b   :  { %v3437_v23 = vld [vmem:[#allocation3 + $0xa8] ss:$16 sps:$4 sm:$0xff]   ;;  %v3438_v24 = vld [vmem:[#allocation3 + $0xc4] ss:$16 sps:$4 sm:$0xff]   ;;  %v3440_v25 = vld [vmem:[#allocation3 + $0xcc] ss:$16 sps:$4 sm:$0xff]  }
  0x1c   :  { %v3442_v26 = vld [vmem:[#allocation3 + $0xc0] ss:$16 sps:$4 sm:$0xff]   ;;  %v3443_v27 = vld [vmem:[#allocation3 + $0xc8] ss:$16 sps:$4 sm:$0xff]   ;;  %v3444_v28 = vld [vmem:[#allocation3 + $0xe4] ss:$16 sps:$4 sm:$0xff]  }
  0x1d   :  { %1366 = vmatpush1.bf16.msra.mxu0 %v3418_v10  ;;  %1705 = vmatpush1.bf16.msra.mxu1 %v3419_v11  ;;  %v3446_v29 = vld [vmem:[#allocation3 + $0xec] ss:$16 sps:$4 sm:$0xff]   ;;  %v3448_v30 = vld [vmem:[#allocation3 + $0xe0] ss:$16 sps:$4 sm:$0xff]   ;;  %v3449_v31 = vld [vmem:[#allocation3 + $0xe8] ss:$16 sps:$4 sm:$0xff]  }
  0x1e   :  { %1367 = vmatprep.subr.bf16.mxu0 %v3420_v12  ;;  %1706 = vmatprep.subr.bf16.mxu1 %v3422_v13  ;;  %v3450_v32 = vld [vmem:[#allocation3 + $0x104] ss:$16 sps:$4 sm:$0xff]   ;;  %v3452_v33 = vld [vmem:[#allocation3 + $0x10c] ss:$16 sps:$4 sm:$0xff]   ;;  %v3454_v34 = vld [vmem:[#allocation3 + $0x100] ss:$16 sps:$4 sm:$0xff]  }
  0x1f   :  { %v3455_v35 = vld [vmem:[#allocation3 + $0x108] ss:$16 sps:$4 sm:$0xff]   ;;  %v3456_v36 = vld [vmem:[#allocation3 + $0x124] ss:$16 sps:$4 sm:$0xff]   ;;  %v3458_v37 = vld [vmem:[#allocation3 + $0x12c] ss:$16 sps:$4 sm:$0xff]  }
  0x20   :  { %v3460_v38 = vld [vmem:[#allocation3 + $0x120] ss:$16 sps:$4 sm:$0xff]   ;;  %v3461_v39 = vld [vmem:[#allocation3 + $0x128] ss:$16 sps:$4 sm:$0xff]   ;;  %v3462_v40 = vld [vmem:[#allocation3 + $0x144] ss:$16 sps:$4 sm:$0xff]  }
  0x21   :  { %1368 = vmatpush1.bf16.msra.mxu0 %v3424_v14  ;;  %1707 = vmatpush1.bf16.msra.mxu1 %v3425_v15  ;;  %v3464_v41 = vld [vmem:[#allocation3 + $0x14c] ss:$16 sps:$4 sm:$0xff]   ;;  %v3466_v42 = vld [vmem:[#allocation3 + $0x140] ss:$16 sps:$4 sm:$0xff]   ;;  %v3467_v43 = vld [vmem:[#allocation3 + $0x148] ss:$16 sps:$4 sm:$0xff]  }
  0x22   :  { %1369 = vmatprep.subr.bf16.mxu0 %v3426_v16  ;;  %1708 = vmatprep.subr.bf16.mxu1 %v3428_v17  ;;  %v3468_v44 = vld [vmem:[#allocation3 + $0x164] ss:$16 sps:$4 sm:$0xff]   ;;  %v3470_v45 = vld [vmem:[#allocation3 + $0x16c] ss:$16 sps:$4 sm:$0xff]   ;;  %v3472_v47 = vld [vmem:[#allocation3 + $0x160] ss:$16 sps:$4 sm:$0xff]  }
  0x23   :  { %v44_v46 = vld [vmem:[%s4358_s0 + $0x8] sm:$0xff]  ;;  %v50_v49 = vld [vmem:[%s4358_s0 + $0x38] sm:$0xff]  ;;  %v3474_v50 = vld [vmem:[#allocation3 + $0x184] ss:$16 sps:$4 sm:$0xff]   ;;  %vm3774_vm0 = vmmov 0   ;;  %vm2611_vm1 = vcmask 261120  }
  0x24   :  { %v3473_v48 = vld [vmem:[#allocation3 + $0x168] ss:$16 sps:$4 sm:$0xff]   ;;  %v140_v51 = vpack.c.bf16 %v50_v49, %v44_v46  ;;  %v3476_v52 = vld [vmem:[#allocation3 + $0x18c] ss:$16 sps:$4 sm:$0xff]   ;;  %v3478_v53 = vld [vmem:[#allocation3 + $0x180] ss:$16 sps:$4 sm:$0xff]  }
  0x25   :  { %1370 = vmatpush1.bf16.msra.mxu0 %v3430_v18  ;;  %1709 = vmatpush1.bf16.msra.mxu1 %v3431_v19  ;;  %v3479_v54 = vld [vmem:[#allocation3 + $0x188] ss:$16 sps:$4 sm:$0xff]   ;;  %v3480_v55 = vld [vmem:[#allocation3 + $0x1a4] ss:$16 sps:$4 sm:$0xff]   ;;  %v3482_v56 = vld [vmem:[#allocation3 + $0x1ac] ss:$16 sps:$4 sm:$0xff]  }
  0x26   :  { %1371 = vmatprep.subr.bf16.mxu0 %v3432_v20  ;;  %1710 = vmatprep.subr.bf16.mxu1 %v3434_v21  ;;  %v3484_v57 = vld [vmem:[#allocation3 + $0x1a0] ss:$16 sps:$4 sm:$0xff]   ;;  %v3485_v58 = vld [vmem:[#allocation3 + $0x1a8] ss:$16 sps:$4 sm:$0xff]   ;;  %v3486_v59 = vld [vmem:[#allocation3 + $0x1c4] ss:$16 sps:$4 sm:$0xff]  }
  0x27   :  { %1393 = vmatprep.mubr.bf16.mxu0 %v140_v51  ;;  %1732 = vmatprep.mubr.bf16.mxu1 %v140_v51  ;;  %v3488_v60 = vld [vmem:[#allocation3 + $0x1cc] ss:$16 sps:$4 sm:$0xff]   ;;  %v3490_v61 = vld [vmem:[#allocation3 + $0x1c0] ss:$16 sps:$4 sm:$0xff]   ;;  %v3491_v62 = vld [vmem:[#allocation3 + $0x1c8] ss:$16 sps:$4 sm:$0xff]  }
  0x28   :  { %v3492_v63 = vld [vmem:[#allocation3 + $0x1e4] ss:$16 sps:$4 sm:$0xff]   ;;  %v3494_v0 = vld [vmem:[#allocation3 + $0x1ec] ss:$16 sps:$4 sm:$0xff]   ;;  %v3496_v1 = vld [vmem:[#allocation3 + $0x1e0] ss:$16 sps:$4 sm:$0xff]  }
  0x29   :  { %1372 = vmatpush1.bf16.msra.mxu0 %v3436_v22  ;;  %1711 = vmatpush1.bf16.msra.mxu1 %v3437_v23  ;;  %v3497_v2 = vld [vmem:[#allocation3 + $0x1e8] ss:$16 sps:$4 sm:$0xff]   ;;  %v43_v3 = vld [vmem:[%s4358_s0] sm:$0xff]  ;;  %v49_v4 = vld [vmem:[%s4358_s0 + $0x30] sm:$0xff]  ;;  %s3776_s11 = smov [#allocation6]  }
  0x2a   :  { %1373 = vmatprep.subr.bf16.mxu0 %v3438_v24  ;;  %1712 = vmatprep.subr.bf16.mxu1 %v3440_v25  ;;  %v3500_v5 = vld [vmem:[#allocation3 + $0x204] ss:$16 sps:$4 sm:$0xff]   ;;  %v3503_v6 = vld [vmem:[#allocation3 + $0x20c] ss:$16 sps:$4 sm:$0xff]   ;;  %v3498_v7 = vld [vmem:[#allocation3 + $0x200] ss:$16 sps:$4 sm:$0xff]   ;;  %v139_v8 = vpack.c.bf16 %v49_v4, %v43_v3 }
  0x2b   :  { %v3501_v9 = vld [vmem:[#allocation3 + $0x208] ss:$16 sps:$4 sm:$0xff]   ;;  %v3506_v12 = vld [vmem:[#allocation3 + $0x224] ss:$16 sps:$4 sm:$0xff]   ;;  %v3509_v13 = vld [vmem:[#allocation3 + $0x22c] ss:$16 sps:$4 sm:$0xff]  }
  0x2c   :  { %v56_v10 = vld [vmem:[%s4358_s0 + $0x68] sm:$0xff]  ;;  %v62_v11 = vld [vmem:[%s4358_s0 + $0x98] sm:$0xff]  ;;  %v3504_v14 = vld [vmem:[#allocation3 + $0x220] ss:$16 sps:$4 sm:$0xff]   ;;  %s2740_s12 = sshll.u32 %s3776_s11, 4  ;;  %s2741_s12 = int_to_ptr.vmem [resolvable:$true] %s2740_s12 }
  0x2d   :  { %1374 = vmatpush1.bf16.msra.mxu0 %v3442_v26  ;;  %1713 = vmatpush1.bf16.msra.mxu1 %v3443_v27  ;;  %v146_v15 = vpack.c.bf16 %v62_v11, %v56_v10  ;;  %v3507_v16 = vld [vmem:[#allocation3 + $0x228] ss:$16 sps:$4 sm:$0xff]   ;;  %v55_v17 = vld [vmem:[%s4358_s0 + $0x60] sm:$0xff]  ;;  %v61_v18 = vld [vmem:[%s4358_s0 + $0x90] sm:$0xff]  ;;  %s3744_s13 = scalar_lea.vmem %s2741_s12, 16  ;;  %s3748_s14 = scalar_lea.vmem %s2741_s12, 32 }
  0x2e   :  { %1375 = vmatprep.subr.bf16.mxu0 %v3444_v28  ;;  %1714 = vmatprep.subr.bf16.mxu1 %v3446_v29  ;;  %v3512_v19 = vld [vmem:[#allocation3 + $0x244] ss:$16 sps:$4 sm:$0xff]   ;;  %v3515_v20 = vld [vmem:[#allocation3 + $0x24c] ss:$16 sps:$4 sm:$0xff]   ;;  %v3510_v21 = vld [vmem:[#allocation3 + $0x240] ss:$16 sps:$4 sm:$0xff]   ;;  %v145_v23 = vpack.c.bf16 %v61_v18, %v55_v17  ;;  %p3745_p8 = scmp.ne.s32.totalorder %s2741_s12, %s3744_s13  ;;  %p3749_p9 = scmp.lt.s32.totalorder %s2741_s12, %s2741_s12 }
  0x2f   :  { %v3513_v22 = vld [vmem:[#allocation3 + $0x248] ss:$16 sps:$4 sm:$0xff]   ;;  %v3518_v26 = vld [vmem:[#allocation3 + $0x264] ss:$16 sps:$4 sm:$0xff]   ;;  %v3521_v27 = vld [vmem:[#allocation3 + $0x26c] ss:$16 sps:$4 sm:$0xff]   ;;  %p3750_p10 = scmp.lt.s32.totalorder %s3748_s14, %s3744_s13 }
  0x30   :  { %v68_v24 = vld [vmem:[%s4358_s0 + $0xc8] sm:$0xff]  ;;  %v74_v25 = vld [vmem:[%s4358_s0 + $0xf8] sm:$0xff]  ;;  %v3516_v29 = vld [vmem:[#allocation3 + $0x260] ss:$16 sps:$4 sm:$0xff]  }
  0x31   :  { %1376 = vmatpush1.bf16.msra.mxu0 %v3448_v30  ;;  %1715 = vmatpush1.bf16.msra.mxu1 %v3449_v31  ;;  %v152_v28 = vpack.c.bf16 %v74_v25, %v68_v24  ;;  %v3519_v30 = vld [vmem:[#allocation3 + $0x268] ss:$16 sps:$4 sm:$0xff]   ;;  %v67_v31 = vld [vmem:[%s4358_s0 + $0xc0] sm:$0xff]  ;;  %v85_v46 = vld [vmem:[%s4358_s0 + $0x150] sm:$0xff]  ;;  %p3751_p11 = por %p3750_p10, %p3749_p9 }
  0x32   :  { %1377 = vmatprep.subr.bf16.mxu0 %v3450_v32  ;;  %1716 = vmatprep.subr.bf16.mxu1 %v3452_v33  ;;  %v73_v32 = vld [vmem:[%s4358_s0 + $0xf0] sm:$0xff]  ;;  %v92_v51 = vld [vmem:[%s4358_s0 + $0x188] sm:$0xff]  ;;  %v122_v17 = vld [vmem:[%s4358_s0 + $0x278] sm:$0xff] }
  0x33   :  { %v3524_v33 = vld [vmem:[#allocation3 + $0x284] ss:$16 sps:$4 sm:$0xff]   ;;  %v3534_v49 = vld [vmem:[#allocation3 + $0x2c0] ss:$16 sps:$4 sm:$0xff]   ;;  %v3549_v3 = vld [vmem:[#allocation3 + $0x308] ss:$16 sps:$4 sm:$0xff]   ;;  %p3752_p12 = pnand %p3751_p11, %p3745_p8 }
  0x34   :  { %v3554_v4 = vld [vmem:[#allocation3 + $0x324] ss:$16 sps:$4 sm:$0xff]   ;;  %vm4298_vm2 = vmpackc.low %vm2611_vm1, %vm2611_vm1 }
  0x35   :  { %1378 = vmatpush1.bf16.msra.mxu0 %v3454_v34  ;;  %1717 = vmatpush1.bf16.msra.mxu1 %v3455_v35  ;;  %v3527_v34 = vld [vmem:[#allocation3 + $0x28c] ss:$16 sps:$4 sm:$0xff]   ;;  %v3522_v35 = vld [vmem:[#allocation3 + $0x280] ss:$16 sps:$4 sm:$0xff]   ;;  %v3560_v11 = vld [vmem:[#allocation3 + $0x344] ss:$16 sps:$4 sm:$0xff]  }
  0x36   :  { %1379 = vmatprep.subr.bf16.mxu0 %v3456_v36  ;;  %1718 = vmatprep.subr.bf16.mxu1 %v3458_v37  ;;  %v3525_v36 = vld [vmem:[#allocation3 + $0x288] ss:$16 sps:$4 sm:$0xff]   ;;  %v151_v37 = vpack.c.bf16 %v73_v32, %v67_v31  ;;  %v109_v10 = vld [vmem:[%s4358_s0 + $0x210] sm:$0xff] }
  0x37   :  { %v3566_v18 = vld [vmem:[#allocation3 + $0x364] ss:$16 sps:$4 sm:$0xff]   ;;  %v134_v31 = vld [vmem:[%s4358_s0 + $0x2d8] sm:$0xff] }
  0x38   :  { %v121_v24 = vld [vmem:[%s4358_s0 + $0x270] sm:$0xff] }
  0x39   :  { %1380 = vmatpush1.bf16.msra.mxu0 %v3460_v38  ;;  %1719 = vmatpush1.bf16.msra.mxu1 %v3461_v39  ;;  %v80_v38 = vld [vmem:[%s4358_s0 + $0x128] sm:$0xff]  ;;  %v86_v39 = vld [vmem:[%s4358_s0 + $0x158] sm:$0xff]  ;;  %v3572_v25 = vld [vmem:[#allocation3 + $0x384] ss:$16 sps:$4 sm:$0xff]  }
  0x3a   :  { %1381 = vmatprep.subr.bf16.mxu0 %v3462_v40  ;;  %1720 = vmatprep.subr.bf16.mxu1 %v3464_v41  ;;  %v3530_v40 = vld [vmem:[#allocation3 + $0x2a4] ss:$16 sps:$4 sm:$0xff]   ;;  %v3533_v41 = vld [vmem:[#allocation3 + $0x2ac] ss:$16 sps:$4 sm:$0xff]  }
  0x3b   :  { %v3578_v32 = vld [vmem:[#allocation3 + $0x3a4] ss:$16 sps:$4 sm:$0xff]  }
  0x3d   :  { %1382 = vmatpush1.bf16.msra.mxu0 %v3466_v42  ;;  %1721 = vmatpush1.bf16.msra.mxu1 %v3467_v43  ;;  %v3528_v42 = vld [vmem:[#allocation3 + $0x2a0] ss:$16 sps:$4 sm:$0xff]   ;;  %v158_v43 = vpack.c.bf16 %v86_v39, %v80_v38  ;;  %v3584_v39 = vld [vmem:[#allocation3 + $0x3c4] ss:$16 sps:$4 sm:$0xff]  }
  0x3e   :  { %1383 = vmatprep.subr.bf16.mxu0 %v3468_v44  ;;  %1722 = vmatprep.subr.bf16.mxu1 %v3470_v45  ;;  %v3531_v44 = vld [vmem:[#allocation3 + $0x2a8] ss:$16 sps:$4 sm:$0xff]   ;;  %v79_v45 = vld [vmem:[%s4358_s0 + $0x120] sm:$0xff]  ;;  %v133_v38 = vld [vmem:[%s4358_s0 + $0x2d0] sm:$0xff] }
  0x41   :  { %1384 = vmatpush1.bf16.msra.mxu0 %v3472_v47  ;;  %1723 = vmatpush1.bf16.msra.mxu1 %v3473_v48  ;;  %v3536_v47 = vld [vmem:[#allocation3 + $0x2c4] ss:$16 sps:$4 sm:$0xff]   ;;  %v3539_v48 = vld [vmem:[#allocation3 + $0x2cc] ss:$16 sps:$4 sm:$0xff]  }
  0x42   :  { %1385 = vmatprep.subr.bf16.mxu0 %v3474_v50  ;;  %1724 = vmatprep.subr.bf16.mxu1 %v3476_v52  ;;  %v157_v50 = vpack.c.bf16 %v85_v46, %v79_v45  ;;  %v98_v52 = vld [vmem:[%s4358_s0 + $0x1b8] sm:$0xff]  ;;  %v52_v45 = vld [vmem:[%s4358_s0 + $0x48] sm:$0xff]  ;;  %v3590_v46 = vld [vmem:[#allocation3 + $0x3e4] ss:$16 sps:$4 sm:$0xff]  }
  0x45   :  { %1386 = vmatpush1.bf16.msra.mxu0 %v3478_v53  ;;  %1725 = vmatpush1.bf16.msra.mxu1 %v3479_v54  ;;  %v3537_v53 = vld [vmem:[#allocation3 + $0x2c8] ss:$16 sps:$4 sm:$0xff]   ;;  %v3542_v54 = vld [vmem:[#allocation3 + $0x2e4] ss:$16 sps:$4 sm:$0xff]  }
  0x46   :  { %1387 = vmatprep.subr.bf16.mxu0 %v3480_v55  ;;  %1726 = vmatprep.subr.bf16.mxu1 %v3482_v56  ;;  %v3545_v55 = vld [vmem:[#allocation3 + $0x2ec] ss:$16 sps:$4 sm:$0xff]   ;;  %v3540_v56 = vld [vmem:[#allocation3 + $0x2e0] ss:$16 sps:$4 sm:$0xff]  }
  0x49   :  { %1388 = vmatpush1.bf16.msra.mxu0 %v3484_v57  ;;  %1727 = vmatpush1.bf16.msra.mxu1 %v3485_v58  ;;  %v3543_v57 = vld [vmem:[#allocation3 + $0x2e8] ss:$16 sps:$4 sm:$0xff]   ;;  %v164_v58 = vpack.c.bf16 %v98_v52, %v92_v51  ;;  %v45_v51 = vld [vmem:[%s4358_s0 + $0x10] sm:$0xff]  ;;  %v51_v52 = vld [vmem:[%s4358_s0 + $0x40] sm:$0xff] }
  0x4a   :  { %1389 = vmatprep.subr.bf16.mxu0 %v3486_v59  ;;  %1728 = vmatprep.subr.bf16.mxu1 %v3488_v60  ;;  %v91_v59 = vld [vmem:[%s4358_s0 + $0x180] sm:$0xff]  ;;  %v97_v60 = vld [vmem:[%s4358_s0 + $0x1b0] sm:$0xff] }
  0x4d   :  { %1390 = vmatpush1.bf16.msra.mxu0 %v3490_v61  ;;  %1729 = vmatpush1.bf16.msra.mxu1 %v3491_v62  ;;  %v3548_v61 = vld [vmem:[#allocation3 + $0x304] ss:$16 sps:$4 sm:$0xff]   ;;  %v3551_v62 = vld [vmem:[#allocation3 + $0x30c] ss:$16 sps:$4 sm:$0xff]  }
  0x4e   :  { %1391 = vmatprep.subr.bf16.mxu0 %v3492_v63  ;;  %1730 = vmatprep.subr.bf16.mxu1 %v3494_v0  ;;  %v163_v63 = vpack.c.bf16 %v97_v60, %v91_v59  ;;  %v104_v0 = vld [vmem:[%s4358_s0 + $0x1e8] sm:$0xff]  ;;  %v3602_v60 = vld [vmem:[#allocation3 + $0x424] ss:$16 sps:$4 sm:$0xff]  }
  0x4f   :  { %v3597_v59 = vld [vmem:[#allocation3 + $0x408] ss:$16 sps:$4 sm:$0xff]  }
  0x51   :  { %1392 = vmatpush1.bf16.msra.mxu0 %v3496_v1  ;;  %1731 = vmatpush1.bf16.msra.mxu1 %v3497_v2  ;;  %v110_v1 = vld [vmem:[%s4358_s0 + $0x218] sm:$0xff]  ;;  %v3546_v2 = vld [vmem:[#allocation3 + $0x300] ss:$16 sps:$4 sm:$0xff]  }
  0x52   :  { %1474 = vmatprep.subr.bf16.mxu0 %v3500_v5  ;;  %1813 = vmatprep.subr.bf16.mxu1 %v3503_v6  ;;  %v3557_v5 = vld [vmem:[#allocation3 + $0x32c] ss:$16 sps:$4 sm:$0xff]   ;;  %v3552_v6 = vld [vmem:[#allocation3 + $0x320] ss:$16 sps:$4 sm:$0xff]  }
  0x54   :  { %1394 = vmatmul.mubr.bf16.vlgmr.msra.gmra.mrb[0].mxu0 %v139_v8  ;;  %1733 = vmatmul.mubr.bf16.vlgmr.msra.gmra.mrb[0].mxu1 %v139_v8  ;;  %v170_v8 = vpack.c.bf16 %v110_v1, %v104_v0  ;;  %v57_v1 = vld [vmem:[%s4358_s0 + $0x70] sm:$0xff] }
  0x55   :  { %1475 = vmatpush1.bf16.msra.mxu0 %v3498_v7  ;;  %1814 = vmatpush1.bf16.msra.mxu1 %v3501_v9  ;;  %v3555_v7 = vld [vmem:[#allocation3 + $0x328] ss:$16 sps:$4 sm:$0xff]   ;;  %v103_v9 = vld [vmem:[%s4358_s0 + $0x1e0] sm:$0xff] }
  0x56   :  { %1476 = vmatprep.subr.bf16.mxu0 %v3506_v12  ;;  %1815 = vmatprep.subr.bf16.mxu1 %v3509_v13  ;;  %v3563_v12 = vld [vmem:[#allocation3 + $0x34c] ss:$16 sps:$4 sm:$0xff]   ;;  %v3558_v13 = vld [vmem:[#allocation3 + $0x340] ss:$16 sps:$4 sm:$0xff]  }
  0x57   :  { %1403 = vmatprep.mubr.bf16.mxu0 %v146_v15  ;;  %1742 = vmatprep.mubr.bf16.mxu1 %v146_v15  ;;  %v3561_v15 = vld [vmem:[#allocation3 + $0x348] ss:$16 sps:$4 sm:$0xff]  }
  0x59   :  { %1477 = vmatpush1.bf16.msra.mxu0 %v3504_v14  ;;  %1816 = vmatpush1.bf16.msra.mxu1 %v3507_v16  ;;  %v169_v14 = vpack.c.bf16 %v109_v10, %v103_v9  ;;  %v116_v16 = vld [vmem:[%s4358_s0 + $0x248] sm:$0xff]  ;;  %v3614_v10 = vld [vmem:[#allocation3 + $0x464] ss:$16 sps:$4 sm:$0xff]  }
  0x5a   :  { %1478 = vmatprep.subr.bf16.mxu0 %v3512_v19  ;;  %1817 = vmatprep.subr.bf16.mxu1 %v3515_v20  ;;  %v3569_v19 = vld [vmem:[#allocation3 + $0x36c] ss:$16 sps:$4 sm:$0xff]   ;;  %v3564_v20 = vld [vmem:[#allocation3 + $0x360] ss:$16 sps:$4 sm:$0xff]   ;;  %v3609_v9 = vld [vmem:[#allocation3 + $0x448] ss:$16 sps:$4 sm:$0xff]  }
  0x5c   :  { %1404 = vmatmul.mubr.bf16.gmra.mrb[4].mxu0 %v145_v23  ;;  %1743 = vmatmul.mubr.bf16.gmra.mrb[4].mxu1 %v145_v23  ;;  %v115_v23 = vld [vmem:[%s4358_s0 + $0x240] sm:$0xff] }
  0x5d   :  { %1479 = vmatpush1.bf16.msra.mxu0 %v3510_v21  ;;  %1818 = vmatpush1.bf16.msra.mxu1 %v3513_v22  ;;  %v176_v21 = vpack.c.bf16 %v122_v17, %v116_v16  ;;  %v3567_v22 = vld [vmem:[#allocation3 + $0x368] ss:$16 sps:$4 sm:$0xff]   ;;  %v75_v16 = vld [vmem:[%s4358_s0 + $0x100] sm:$0xff] }
  0x5e   :  { %1480 = vmatprep.subr.bf16.mxu0 %v3518_v26  ;;  %1819 = vmatprep.subr.bf16.mxu1 %v3521_v27  ;;  %v3575_v26 = vld [vmem:[#allocation3 + $0x38c] ss:$16 sps:$4 sm:$0xff]   ;;  %v3570_v27 = vld [vmem:[#allocation3 + $0x380] ss:$16 sps:$4 sm:$0xff]   ;;  %v3620_v17 = vld [vmem:[#allocation3 + $0x484] ss:$16 sps:$4 sm:$0xff]  }
  0x5f   :  { %1413 = vmatprep.mubr.bf16.mxu0 %v152_v28  ;;  %1752 = vmatprep.mubr.bf16.mxu1 %v152_v28  ;;  %v3573_v28 = vld [vmem:[#allocation3 + $0x388] ss:$16 sps:$4 sm:$0xff]  }
  0x61   :  { %1481 = vmatpush1.bf16.msra.mxu0 %v3516_v29  ;;  %1820 = vmatpush1.bf16.msra.mxu1 %v3519_v30  ;;  %v175_v29 = vpack.c.bf16 %v121_v24, %v115_v23  ;;  %v128_v30 = vld [vmem:[%s4358_s0 + $0x2a8] sm:$0xff]  ;;  %v3626_v24 = vld [vmem:[#allocation3 + $0x4a4] ss:$16 sps:$4 sm:$0xff]  }
  0x62   :  { %1482 = vmatprep.subr.bf16.mxu0 %v3524_v33  ;;  %1821 = vmatprep.subr.bf16.mxu1 %v3527_v34  ;;  %v3581_v33 = vld [vmem:[#allocation3 + $0x3ac] ss:$16 sps:$4 sm:$0xff]   ;;  %v182_v34 = vpack.c.bf16 %v134_v31, %v128_v30  ;;  %v87_v30 = vld [vmem:[%s4358_s0 + $0x160] sm:$0xff] }
  0x63   :  { %v88_v23 = vld [vmem:[%s4358_s0 + $0x168] sm:$0xff]  ;;  %v3632_v31 = vld [vmem:[#allocation3 + $0x4c4] ss:$16 sps:$4 sm:$0xff]  }
  0x64   :  { %1414 = vmatmul.mubr.bf16.gmra.mrb[8].mxu0 %v151_v37  ;;  %1753 = vmatmul.mubr.bf16.gmra.mrb[8].mxu1 %v151_v37  ;;  %v127_v37 = vld [vmem:[%s4358_s0 + $0x2a0] sm:$0xff] }
  0x65   :  { %1483 = vmatpush1.bf16.msra.mxu0 %v3522_v35  ;;  %1822 = vmatpush1.bf16.msra.mxu1 %v3525_v36  ;;  %v3576_v35 = vld [vmem:[#allocation3 + $0x3a0] ss:$16 sps:$4 sm:$0xff]   ;;  %v3579_v36 = vld [vmem:[#allocation3 + $0x3a8] ss:$16 sps:$4 sm:$0xff]  }
  0x66   :  { %1484 = vmatprep.subr.bf16.mxu0 %v3530_v40  ;;  %1823 = vmatprep.subr.bf16.mxu1 %v3533_v41  ;;  %v3587_v40 = vld [vmem:[#allocation3 + $0x3cc] ss:$16 sps:$4 sm:$0xff]   ;;  %v3582_v41 = vld [vmem:[#allocation3 + $0x3c0] ss:$16 sps:$4 sm:$0xff]  }
  0x67   :  { %1423 = vmatprep.mubr.bf16.mxu0 %v158_v43  ;;  %1762 = vmatprep.mubr.bf16.mxu1 %v158_v43  ;;  %v181_v43 = vpack.c.bf16 %v133_v38, %v127_v37  ;;  %v3633_v37 = vld [vmem:[#allocation3 + $0x4c8] ss:$16 sps:$4 sm:$0xff]   ;;  %v3638_v38 = vld [vmem:[#allocation3 + $0x4e4] ss:$16 sps:$4 sm:$0xff]  }
  0x69   :  { %1485 = vmatpush1.bf16.msra.mxu0 %v3528_v42  ;;  %1824 = vmatpush1.bf16.msra.mxu1 %v3531_v44  ;;  %v3585_v42 = vld [vmem:[#allocation3 + $0x3c8] ss:$16 sps:$4 sm:$0xff]  }
  0x6a   :  { %1486 = vmatprep.subr.bf16.mxu0 %v3536_v47  ;;  %1825 = vmatprep.subr.bf16.mxu1 %v3539_v48  ;;  %v46_v44 = vld [vmem:[%s4358_s0 + $0x18] sm:$0xff]  ;;  %v3588_v48 = vld [vmem:[#allocation3 + $0x3e0] ss:$16 sps:$4 sm:$0xff]  }
  0x6b   :  { %v3593_v47 = vld [vmem:[#allocation3 + $0x3ec] ss:$16 sps:$4 sm:$0xff]  }
  0x6c   :  { %1424 = vmatmul.mubr.bf16.gmra.mrb[12].mxu0 %v157_v50  ;;  %1763 = vmatmul.mubr.bf16.gmra.mrb[12].mxu1 %v157_v50  ;;  %v3591_v50 = vld [vmem:[#allocation3 + $0x3e8] ss:$16 sps:$4 sm:$0xff]  }
  0x6d   :  { %1487 = vmatpush1.bf16.msra.mxu0 %v3534_v49  ;;  %1826 = vmatpush1.bf16.msra.mxu1 %v3537_v53  ;;  %v142_v49 = vpack.c.bf16 %v52_v45, %v46_v44  ;;  %v3596_v53 = vld [vmem:[#allocation3 + $0x404] ss:$16 sps:$4 sm:$0xff]  }
  0x6e   :  { %1488 = vmatprep.subr.bf16.mxu0 %v3542_v54  ;;  %1827 = vmatprep.subr.bf16.mxu1 %v3545_v55  ;;  %v3599_v54 = vld [vmem:[#allocation3 + $0x40c] ss:$16 sps:$4 sm:$0xff]   ;;  %v3594_v55 = vld [vmem:[#allocation3 + $0x400] ss:$16 sps:$4 sm:$0xff]   ;;  %v3644_v45 = vld [vmem:[#allocation3 + $0x504] ss:$16 sps:$4 sm:$0xff]  }
  0x6f   :  { %1433 = vmatprep.mubr.bf16.mxu0 %v164_v58  ;;  %1772 = vmatprep.mubr.bf16.mxu1 %v164_v58  ;;  %v64_v58 = vld [vmem:[%s4358_s0 + $0xa8] sm:$0xff]  ;;  %v99_v44 = vld [vmem:[%s4358_s0 + $0x1c0] sm:$0xff] }
  0x71   :  { %1489 = vmatpush1.bf16.msra.mxu0 %v3540_v56  ;;  %1828 = vmatpush1.bf16.msra.mxu1 %v3543_v57  ;;  %v141_v56 = vpack.c.bf16 %v51_v52, %v45_v51  ;;  %v58_v57 = vld [vmem:[%s4358_s0 + $0x78] sm:$0xff]  ;;  %v112_v51 = vld [vmem:[%s4358_s0 + $0x228] sm:$0xff]  ;;  %v3650_v52 = vld [vmem:[#allocation3 + $0x524] ss:$16 sps:$4 sm:$0xff]  }
  0x72   :  { %1490 = vmatprep.subr.bf16.mxu0 %v3548_v61  ;;  %1829 = vmatprep.subr.bf16.mxu1 %v3551_v62  ;;  %v3605_v61 = vld [vmem:[#allocation3 + $0x42c] ss:$16 sps:$4 sm:$0xff]   ;;  %v3600_v62 = vld [vmem:[#allocation3 + $0x420] ss:$16 sps:$4 sm:$0xff]   ;;  %v148_v0 = vpack.c.bf16 %v64_v58, %v58_v57 }
  0x73   :  { %v105_v57 = vld [vmem:[%s4358_s0 + $0x1f0] sm:$0xff]  ;;  %v111_v58 = vld [vmem:[%s4358_s0 + $0x220] sm:$0xff] }
  0x74   :  { %1434 = vmatmul.mubr.bf16.gmra.mrb[16].mxu0 %v163_v63  ;;  %1773 = vmatmul.mubr.bf16.gmra.mrb[16].mxu1 %v163_v63  ;;  %v3603_v63 = vld [vmem:[#allocation3 + $0x428] ss:$16 sps:$4 sm:$0xff]  }
  0x75   :  { %1491 = vmatpush1.bf16.msra.mxu0 %v3546_v2  ;;  %1830 = vmatpush1.bf16.msra.mxu1 %v3549_v3  ;;  %v63_v2 = vld [vmem:[%s4358_s0 + $0xa0] sm:$0xff] }
  0x76   :  { %1492 = vmatprep.subr.bf16.mxu0 %v3554_v4  ;;  %1831 = vmatprep.subr.bf16.mxu1 %v3557_v5  ;;  %v3608_v3 = vld [vmem:[#allocation3 + $0x444] ss:$16 sps:$4 sm:$0xff]   ;;  %v3611_v4 = vld [vmem:[#allocation3 + $0x44c] ss:$16 sps:$4 sm:$0xff]   ;;  %v147_v5 = vpack.c.bf16 %v63_v2, %v57_v1 }
  0x77   :  { %1443 = vmatprep.mubr.bf16.mxu0 %v170_v8  ;;  %1782 = vmatprep.mubr.bf16.mxu1 %v170_v8  ;;  %v3606_v8 = vld [vmem:[#allocation3 + $0x440] ss:$16 sps:$4 sm:$0xff]   ;;  %v124_v1 = vld [vmem:[%s4358_s0 + $0x288] sm:$0xff]  ;;  %v3662_v2 = vld [vmem:[#allocation3 + $0x564] ss:$16 sps:$4 sm:$0xff]  }
  0x79   :  { %1493 = vmatpush1.bf16.msra.mxu0 %v3552_v6  ;;  %1832 = vmatpush1.bf16.msra.mxu1 %v3555_v7  ;;  %v70_v6 = vld [vmem:[%s4358_s0 + $0xd8] sm:$0xff]  ;;  %v76_v7 = vld [vmem:[%s4358_s0 + $0x108] sm:$0xff] }
  0x7a   :  { %1494 = vmatprep.subr.bf16.mxu0 %v3560_v11  ;;  %1833 = vmatprep.subr.bf16.mxu1 %v3563_v12  ;;  %v3617_v11 = vld [vmem:[#allocation3 + $0x46c] ss:$16 sps:$4 sm:$0xff]   ;;  %v3612_v12 = vld [vmem:[#allocation3 + $0x460] ss:$16 sps:$4 sm:$0xff]  }
  0x7c   :  { %1444 = vmatmul.mubr.bf16.gmra.mrb[20].mxu0 %v169_v14  ;;  %1783 = vmatmul.mubr.bf16.gmra.mrb[20].mxu1 %v169_v14  ;;  %v154_v14 = vpack.c.bf16 %v76_v7, %v70_v6  ;;  %v117_v7 = vld [vmem:[%s4358_s0 + $0x250] sm:$0xff] }
  0x7d   :  { %1495 = vmatpush1.bf16.msra.mxu0 %v3558_v13  ;;  %1834 = vmatpush1.bf16.msra.mxu1 %v3561_v15  ;;  %v3615_v13 = vld [vmem:[#allocation3 + $0x468] ss:$16 sps:$4 sm:$0xff]   ;;  %v69_v15 = vld [vmem:[%s4358_s0 + $0xd0] sm:$0xff] }
  0x7e   :  { %1496 = vmatprep.subr.bf16.mxu0 %v3566_v18  ;;  %1835 = vmatprep.subr.bf16.mxu1 %v3569_v19  ;;  %v3623_v18 = vld [vmem:[#allocation3 + $0x48c] ss:$16 sps:$4 sm:$0xff]   ;;  %v3618_v19 = vld [vmem:[#allocation3 + $0x480] ss:$16 sps:$4 sm:$0xff]  }
  0x7f   :  { %1453 = vmatprep.mubr.bf16.mxu0 %v176_v21  ;;  %1792 = vmatprep.mubr.bf16.mxu1 %v176_v21  ;;  %v3621_v21 = vld [vmem:[#allocation3 + $0x488] ss:$16 sps:$4 sm:$0xff]  }
  0x81   :  { %1497 = vmatpush1.bf16.msra.mxu0 %v3564_v20  ;;  %1836 = vmatpush1.bf16.msra.mxu1 %v3567_v22  ;;  %v153_v20 = vpack.c.bf16 %v75_v16, %v69_v15  ;;  %v82_v22 = vld [vmem:[%s4358_s0 + $0x138] sm:$0xff]  ;;  %v136_v15 = vld [vmem:[%s4358_s0 + $0x2e8] sm:$0xff]  ;;  %v3674_v16 = vld [vmem:[#allocation3 + $0x5a4] ss:$16 sps:$4 sm:$0xff]  }
  0x82   :  { %1498 = vmatprep.subr.bf16.mxu0 %v3572_v25  ;;  %1837 = vmatprep.subr.bf16.mxu1 %v3575_v26  ;;  %v3629_v25 = vld [vmem:[#allocation3 + $0x4ac] ss:$16 sps:$4 sm:$0xff]   ;;  %v3624_v26 = vld [vmem:[#allocation3 + $0x4a0] ss:$16 sps:$4 sm:$0xff]  }
  0x84   :  { %1454 = vmatmul.mubr.bf16.gmra.mrb[24].mxu0 %v175_v29  ;;  %1793 = vmatmul.mubr.bf16.gmra.mrb[24].mxu1 %v175_v29  ;;  %v81_v29 = vld [vmem:[%s4358_s0 + $0x130] sm:$0xff] }
  0x85   :  { %1499 = vmatpush1.bf16.msra.mxu0 %v3570_v27  ;;  %1838 = vmatpush1.bf16.msra.mxu1 %v3573_v28  ;;  %v160_v27 = vpack.c.bf16 %v88_v23, %v82_v22  ;;  %v3627_v28 = vld [vmem:[#allocation3 + $0x4a8] ss:$16 sps:$4 sm:$0xff]   ;;  %v135_v22 = vld [vmem:[%s4358_s0 + $0x2e0] sm:$0xff] }
  0x86   :  { %1500 = vmatprep.subr.bf16.mxu0 %v3578_v32  ;;  %1839 = vmatprep.subr.bf16.mxu1 %v3581_v33  ;;  %v3635_v32 = vld [vmem:[#allocation3 + $0x4cc] ss:$16 sps:$4 sm:$0xff]   ;;  %v159_v33 = vpack.c.bf16 %v87_v30, %v81_v29  ;;  %v3680_v23 = vld [vmem:[#allocation3 + $0x5c4] ss:$16 sps:$4 sm:$0xff]  }
  0x87   :  { %1463 = vmatprep.mubr.bf16.mxu0 %v182_v34  ;;  %1802 = vmatprep.mubr.bf16.mxu1 %v182_v34  ;;  %v94_v34 = vld [vmem:[%s4358_s0 + $0x198] sm:$0xff]  ;;  %v3686_v30 = vld [vmem:[#allocation3 + $0x5e4] ss:$16 sps:$4 sm:$0xff]  }
  0x88   :  { %v54_v29 = vld [vmem:[%s4358_s0 + $0x58] sm:$0xff] }
  0x89   :  { %1501 = vmatpush1.bf16.msra.mxu0 %v3576_v35  ;;  %1840 = vmatpush1.bf16.msra.mxu1 %v3579_v36  ;;  %v100_v35 = vld [vmem:[%s4358_s0 + $0x1c8] sm:$0xff]  ;;  %v3630_v36 = vld [vmem:[#allocation3 + $0x4c0] ss:$16 sps:$4 sm:$0xff]  }
  0x8a   :  { %1502 = vmatprep.subr.bf16.mxu0 %v3584_v39  ;;  %1841 = vmatprep.subr.bf16.mxu1 %v3587_v40  ;;  %v3641_v39 = vld [vmem:[#allocation3 + $0x4ec] ss:$16 sps:$4 sm:$0xff]   ;;  %v166_v40 = vpack.c.bf16 %v100_v35, %v94_v34  ;;  %v47_v35 = vld [vmem:[%s4358_s0 + $0x20] sm:$0xff] }
  0x8c   :  { %1464 = vmatmul.mubr.bf16.gmra.mrb[28].mxu0 %v181_v43  ;;  %1803 = vmatmul.mubr.bf16.gmra.mrb[28].mxu1 %v181_v43  ;;  %v93_v43 = vld [vmem:[%s4358_s0 + $0x190] sm:$0xff] }
  0x8d   :  { %1503 = vmatpush1.bf16.msra.mxu0 %v3582_v41  ;;  %1842 = vmatpush1.bf16.msra.mxu1 %v3585_v42  ;;  %v3636_v41 = vld [vmem:[#allocation3 + $0x4e0] ss:$16 sps:$4 sm:$0xff]   ;;  %v3639_v42 = vld [vmem:[#allocation3 + $0x4e8] ss:$16 sps:$4 sm:$0xff]  }
  0x8e   :  { %1504 = vmatprep.subr.bf16.mxu0 %v3590_v46  ;;  %1843 = vmatprep.subr.bf16.mxu1 %v3593_v47  ;;  %v3647_v46 = vld [vmem:[#allocation3 + $0x50c] ss:$16 sps:$4 sm:$0xff]   ;;  %v3642_v47 = vld [vmem:[#allocation3 + $0x500] ss:$16 sps:$4 sm:$0xff]  }
  0x8f   :  { %1506 = vmatprep.mubr.bf16.mxu0 %v142_v49  ;;  %1845 = vmatprep.mubr.bf16.mxu1 %v142_v49  ;;  %v3645_v49 = vld [vmem:[#allocation3 + $0x508] ss:$16 sps:$4 sm:$0xff]  }
  0x91   :  { %1505 = vmatpush1.bf16.msra.mxu0 %v3588_v48  ;;  %1844 = vmatpush1.bf16.msra.mxu1 %v3591_v50  ;;  %v165_v48 = vpack.c.bf16 %v99_v44, %v93_v43  ;;  %v106_v50 = vld [vmem:[%s4358_s0 + $0x1f8] sm:$0xff]  ;;  %v3691_v43 = vld [vmem:[%s4361_s3] sm:$0xff]  }
  0x92   :  { %1587 = vmatprep.subr.bf16.mxu0 %v3596_v53  ;;  %1926 = vmatprep.subr.bf16.mxu1 %v3599_v54  ;;  %v3653_v53 = vld [vmem:[#allocation3 + $0x52c] ss:$16 sps:$4 sm:$0xff]   ;;  %v3648_v54 = vld [vmem:[#allocation3 + $0x520] ss:$16 sps:$4 sm:$0xff]  }
  0x93   :  { %v3693_v44 = vld [vmem:[%s4361_s3 + $0x80] sm:$0xff]  }
  0x94   :  { %1507 = vmatmul.mubr.bf16.vlgmr.msra.gmra.mrb[0].mxu0 %v141_v56  ;;  %1846 = vmatmul.mubr.bf16.vlgmr.msra.gmra.mrb[0].mxu1 %v141_v56  ;;  %v172_v56 = vpack.c.bf16 %v112_v51, %v106_v50  ;;  %v78_v50 = vld [vmem:[%s4358_s0 + $0x118] sm:$0xff]  ;;  %v3695_v51 = vld [vmem:[%s4361_s3 + $0x8] sm:$0xff]  }
  0x95   :  { %1588 = vmatpush1.bf16.msra.mxu0 %v3594_v55  ;;  %1927 = vmatpush1.bf16.msra.mxu1 %v3597_v59  ;;  %v3651_v55 = vld [vmem:[#allocation3 + $0x528] ss:$16 sps:$4 sm:$0xff]   ;;  %v3656_v59 = vld [vmem:[#allocation3 + $0x544] ss:$16 sps:$4 sm:$0xff]  }
  0x96   :  { %1589 = vmatprep.subr.bf16.mxu0 %v3602_v60  ;;  %1928 = vmatprep.subr.bf16.mxu1 %v3605_v61  ;;  %v3659_v60 = vld [vmem:[#allocation3 + $0x54c] ss:$16 sps:$4 sm:$0xff]   ;;  %v3654_v61 = vld [vmem:[#allocation3 + $0x540] ss:$16 sps:$4 sm:$0xff]  }
  0x97   :  { %1516 = vmatprep.mubr.bf16.mxu0 %v148_v0  ;;  %1855 = vmatprep.mubr.bf16.mxu1 %v148_v0  ;;  %v171_v0 = vpack.c.bf16 %v111_v58, %v105_v57  ;;  %v3699_v57 = vld [vmem:[%s4361_s3 + $0x10] sm:$0xff]  }
  0x98   :  { %v3701_v58 = vld [vmem:[%s4361_s3 + $0x90] sm:$0xff]  }
  0x99   :  { %1590 = vmatpush1.bf16.msra.mxu0 %v3600_v62  ;;  %1929 = vmatpush1.bf16.msra.mxu1 %v3603_v63  ;;  %v3657_v62 = vld [vmem:[#allocation3 + $0x548] ss:$16 sps:$4 sm:$0xff]  }
  0x9a   :  { %1591 = vmatprep.subr.bf16.mxu0 %v3608_v3  ;;  %1930 = vmatprep.subr.bf16.mxu1 %v3611_v4  ;;  %v118_v63 = vld [vmem:[%s4358_s0 + $0x258] sm:$0xff]  ;;  %v3660_v4 = vld [vmem:[#allocation3 + $0x560] ss:$16 sps:$4 sm:$0xff]  }
  0x9b   :  { %v3665_v3 = vld [vmem:[#allocation3 + $0x56c] ss:$16 sps:$4 sm:$0xff]   ;;  %v178_v6 = vpack.c.bf16 %v124_v1, %v118_v63 }
  0x9c   :  { %1517 = vmatmul.mubr.bf16.gmra.mrb[4].mxu0 %v147_v5  ;;  %1856 = vmatmul.mubr.bf16.gmra.mrb[4].mxu1 %v147_v5  ;;  %v3663_v5 = vld [vmem:[#allocation3 + $0x568] ss:$16 sps:$4 sm:$0xff]  }
  0x9d   :  { %1592 = vmatpush1.bf16.msra.mxu0 %v3606_v8  ;;  %1931 = vmatpush1.bf16.msra.mxu1 %v3609_v9  ;;  %v123_v8 = vld [vmem:[%s4358_s0 + $0x280] sm:$0xff]  ;;  %v84_v63 = vld [vmem:[%s4358_s0 + $0x148] sm:$0xff]  ;;  %v3703_v1 = vld [vmem:[%s4361_s3 + $0x18] sm:$0xff]  }
  0x9e   :  { %1593 = vmatprep.subr.bf16.mxu0 %v3614_v10  ;;  %1932 = vmatprep.subr.bf16.mxu1 %v3617_v11  ;;  %v3668_v9 = vld [vmem:[#allocation3 + $0x584] ss:$16 sps:$4 sm:$0xff]   ;;  %v3671_v10 = vld [vmem:[#allocation3 + $0x58c] ss:$16 sps:$4 sm:$0xff]   ;;  %v3666_v11 = vld [vmem:[#allocation3 + $0x580] ss:$16 sps:$4 sm:$0xff]  }
  0x9f   :  { %1526 = vmatprep.mubr.bf16.mxu0 %v154_v14  ;;  %1865 = vmatprep.mubr.bf16.mxu1 %v154_v14  ;;  %v177_v14 = vpack.c.bf16 %v123_v8, %v117_v7  ;;  %v3707_v7 = vld [vmem:[%s4361_s3 + $0x20] sm:$0xff]  }
  0xa0   :  { %v3709_v8 = vld [vmem:[%s4361_s3 + $0xa0] sm:$0xff]  }
  0xa1   :  { %1594 = vmatpush1.bf16.msra.mxu0 %v3612_v12  ;;  %1933 = vmatpush1.bf16.msra.mxu1 %v3615_v13  ;;  %v3669_v12 = vld [vmem:[#allocation3 + $0x588] ss:$16 sps:$4 sm:$0xff]  }
  0xa2   :  { %1595 = vmatprep.subr.bf16.mxu0 %v3620_v17  ;;  %1934 = vmatprep.subr.bf16.mxu1 %v3623_v18  ;;  %v130_v13 = vld [vmem:[%s4358_s0 + $0x2b8] sm:$0xff]  ;;  %v3672_v18 = vld [vmem:[#allocation3 + $0x5a0] ss:$16 sps:$4 sm:$0xff]  }
  0xa3   :  { %v3677_v17 = vld [vmem:[#allocation3 + $0x5ac] ss:$16 sps:$4 sm:$0xff]  }
  0xa4   :  { %1527 = vmatmul.mubr.bf16.gmra.mrb[8].mxu0 %v153_v20  ;;  %1866 = vmatmul.mubr.bf16.gmra.mrb[8].mxu1 %v153_v20  ;;  %v184_v20 = vpack.c.bf16 %v136_v15, %v130_v13  ;;  %v96_v13 = vld [vmem:[%s4358_s0 + $0x1a8] sm:$0xff] }
  0xa5   :  { %1596 = vmatpush1.bf16.msra.mxu0 %v3618_v19  ;;  %1935 = vmatpush1.bf16.msra.mxu1 %v3621_v21  ;;  %v3675_v19 = vld [vmem:[#allocation3 + $0x5a8] ss:$16 sps:$4 sm:$0xff]   ;;  %v129_v21 = vld [vmem:[%s4358_s0 + $0x2b0] sm:$0xff] }
  0xa6   :  { %1597 = vmatprep.subr.bf16.mxu0 %v3626_v24  ;;  %1936 = vmatprep.subr.bf16.mxu1 %v3629_v25  ;;  %v3683_v24 = vld [vmem:[#allocation3 + $0x5cc] ss:$16 sps:$4 sm:$0xff]   ;;  %v3678_v25 = vld [vmem:[#allocation3 + $0x5c0] ss:$16 sps:$4 sm:$0xff]  }
  0xa7   :  { %1536 = vmatprep.mubr.bf16.mxu0 %v160_v27  ;;  %1875 = vmatprep.mubr.bf16.mxu1 %v160_v27  ;;  %v48_v27 = vld [vmem:[%s4358_s0 + $0x28] sm:$0xff] }
  0xa8   :  { %v144_v34 = vpack.c.bf16 %v54_v29, %v48_v27  ;;  %v3711_v15 = vld [vmem:[%s4361_s3 + $0x28] sm:$0xff]   ;;  %v107_v29 = vld [vmem:[%s4358_s0 + $0x200] sm:$0xff] }
  0xa9   :  { %1598 = vmatpush1.bf16.msra.mxu0 %v3624_v26  ;;  %1937 = vmatpush1.bf16.msra.mxu1 %v3627_v28  ;;  %v3681_v26 = vld [vmem:[#allocation3 + $0x5c8] ss:$16 sps:$4 sm:$0xff]   ;;  %v183_v28 = vpack.c.bf16 %v135_v22, %v129_v21  ;;  %v3715_v21 = vld [vmem:[%s4361_s3 + $0x30] sm:$0xff]  }
  0xaa   :  { %1599 = vmatprep.subr.bf16.mxu0 %v3632_v31  ;;  %1938 = vmatprep.subr.bf16.mxu1 %v3635_v32  ;;  %v3689_v31 = vld [vmem:[#allocation3 + $0x5ec] ss:$16 sps:$4 sm:$0xff]   ;;  %v3684_v32 = vld [vmem:[#allocation3 + $0x5e0] ss:$16 sps:$4 sm:$0xff]  }
  0xab   :  { %v3717_v22 = vld [vmem:[%s4361_s3 + $0xb0] sm:$0xff]  }
  0xac   :  { %1537 = vmatmul.mubr.bf16.gmra.mrb[12].mxu0 %v159_v33  ;;  %1876 = vmatmul.mubr.bf16.gmra.mrb[12].mxu1 %v159_v33  ;;  %v3687_v33 = vld [vmem:[#allocation3 + $0x5e8] ss:$16 sps:$4 sm:$0xff]  }
  0xad   :  { %1600 = vmatpush1.bf16.msra.mxu0 %v3630_v36  ;;  %1939 = vmatpush1.bf16.msra.mxu1 %v3633_v37  ;;  %v53_v36 = vld [vmem:[%s4358_s0 + $0x50] sm:$0xff]  ;;  %v60_v37 = vld [vmem:[%s4358_s0 + $0x88] sm:$0xff] }
  0xae   :  { %1601 = vmatprep.subr.bf16.mxu0 %v3638_v38  ;;  %1940 = vmatprep.subr.bf16.mxu1 %v3641_v39  ;;  %v66_v38 = vld [vmem:[%s4358_s0 + $0xb8] sm:$0xff]  ;;  %v3690_v39 = vld [vmem:[%s4361_s3 + $0x40] sm:$0xff]  }
  0xaf   :  { %1546 = vmatprep.mubr.bf16.mxu0 %v166_v40  ;;  %1885 = vmatprep.mubr.bf16.mxu1 %v166_v40  ;;  %v3692_v40 = vld [vmem:[%s4361_s3 + $0xc0] sm:$0xff]  }
  0xb1   :  { %1602 = vmatpush1.bf16.msra.mxu0 %v3636_v41  ;;  %1941 = vmatpush1.bf16.msra.mxu1 %v3639_v42  ;;  %v143_v41 = vpack.c.bf16 %v53_v36, %v47_v35  ;;  %v150_v42 = vpack.c.bf16 %v66_v38, %v60_v37  ;;  %v119_v35 = vld [vmem:[%s4358_s0 + $0x260] sm:$0xff]  ;;  %v125_v36 = vld [vmem:[%s4358_s0 + $0x290] sm:$0xff]  ;;  %v132_v37 = vld [vmem:[%s4358_s0 + $0x2c8] sm:$0xff] }
  0xb2   :  { %1603 = vmatprep.subr.bf16.mxu0 %v3644_v45  ;;  %1942 = vmatprep.subr.bf16.mxu1 %v3647_v46  ;;  %v3694_v45 = vld [vmem:[%s4361_s3 + $0x48] sm:$0xff]   ;;  %v138_v38 = vld [vmem:[%s4358_s0 + $0x2f8] sm:$0xff] }
  0xb3   :  { %v3696_v46 = vld [vmem:[%s4361_s3 + $0xc8] sm:$0xff]  }
  0xb4   :  { %1547 = vmatmul.mubr.bf16.gmra.mrb[16].mxu0 %v165_v48  ;;  %1886 = vmatmul.mubr.bf16.gmra.mrb[16].mxu1 %v165_v48  ;;  %v65_v48 = vld [vmem:[%s4358_s0 + $0xb0] sm:$0xff] }
  0xb5   :  { %1604 = vmatpush1.bf16.msra.mxu0 %v3642_v47  ;;  %1943 = vmatpush1.bf16.msra.mxu1 %v3645_v49  ;;  %v59_v47 = vld [vmem:[%s4358_s0 + $0x80] sm:$0xff]  ;;  %v72_v49 = vld [vmem:[%s4358_s0 + $0xe8] sm:$0xff] }
  0xb6   :  { %1605 = vmatprep.subr.bf16.mxu0 %v3650_v52  ;;  %1944 = vmatprep.subr.bf16.mxu1 %v3653_v53  ;;  %v3697_v52 = vld [vmem:[%s4361_s3 + $0x88] sm:$0xff]   ;;  %v3698_v53 = vld [vmem:[%s4361_s3 + $0x50] sm:$0xff]  }
  0xb7   :  { %1556 = vmatprep.mubr.bf16.mxu0 %v172_v56  ;;  %1895 = vmatprep.mubr.bf16.mxu1 %v172_v56  ;;  %v156_v56 = vpack.c.bf16 %v78_v50, %v72_v49 }
  0xb9   :  { %1606 = vmatpush1.bf16.msra.mxu0 %v3648_v54  ;;  %1945 = vmatpush1.bf16.msra.mxu1 %v3651_v55  ;;  %v3700_v54 = vld [vmem:[%s4361_s3 + $0xd0] sm:$0xff]   ;;  %v149_v55 = vpack.c.bf16 %v65_v48, %v59_v47  ;;  %v3721_v47 = vld [vmem:[%s4361_s3 + $0xb8] sm:$0xff]   ;;  %v381_v48 = vlaneseq }
  0xba   :  { %1607 = vmatprep.subr.bf16.mxu0 %v3656_v59  ;;  %1946 = vmatprep.subr.bf16.mxu1 %v3659_v60  ;;  %v3702_v59 = vld [vmem:[%s4361_s3 + $0x58] sm:$0xff]  }
  0xbb   :  { %v3704_v60 = vld [vmem:[%s4361_s3 + $0xd8] sm:$0xff]   ;;  %v382_v49 = vshrl.u32 %v381_v48, 7 }
  0xbc   :  { %1557 = vmatmul.mubr.bf16.gmra.mrb[20].mxu0 %v171_v0  ;;  %1896 = vmatmul.mubr.bf16.gmra.mrb[20].mxu1 %v171_v0  ;;  %v90_v0 = vld [vmem:[%s4358_s0 + $0x178] sm:$0xff] }
  0xbd   :  { %1608 = vmatpush1.bf16.msra.mxu0 %v3654_v61  ;;  %1947 = vmatpush1.bf16.msra.mxu1 %v3657_v62  ;;  %v71_v61 = vld [vmem:[%s4358_s0 + $0xe0] sm:$0xff]  ;;  %v77_v62 = vld [vmem:[%s4358_s0 + $0x110] sm:$0xff]  ;;  %v383_v50 = vsub.s32 0, %v382_v49 }
  0xbe   :  { %1609 = vmatprep.subr.bf16.mxu0 %v3662_v2  ;;  %1948 = vmatprep.subr.bf16.mxu1 %v3665_v3  ;;  %v3705_v2 = vld [vmem:[%s4361_s3 + $0x98] sm:$0xff]   ;;  %v3706_v3 = vld [vmem:[%s4361_s3 + $0x60] sm:$0xff]  }
  0xbf   :  { %1566 = vmatprep.mubr.bf16.mxu0 %v178_v6  ;;  %1905 = vmatprep.mubr.bf16.mxu1 %v178_v6  ;;  %v162_v6 = vpack.c.bf16 %v90_v0, %v84_v63 }
  0xc1   :  { %1610 = vmatpush1.bf16.msra.mxu0 %v3660_v4  ;;  %1949 = vmatpush1.bf16.msra.mxu1 %v3663_v5  ;;  %v3708_v4 = vld [vmem:[%s4361_s3 + $0xe0] sm:$0xff]   ;;  %v155_v5 = vpack.c.bf16 %v77_v62, %v71_v61 }
  0xc2   :  { %1611 = vmatprep.subr.bf16.mxu0 %v3668_v9  ;;  %1950 = vmatprep.subr.bf16.mxu1 %v3671_v10  ;;  %v3710_v9 = vld [vmem:[%s4361_s3 + $0x68] sm:$0xff]  }
  0xc3   :  { %v3712_v10 = vld [vmem:[%s4361_s3 + $0xe8] sm:$0xff]  }
  0xc4   :  { %1567 = vmatmul.mubr.bf16.gmra.mrb[24].mxu0 %v177_v14  ;;  %1906 = vmatmul.mubr.bf16.gmra.mrb[24].mxu1 %v177_v14  ;;  %v102_v14 = vld [vmem:[%s4358_s0 + $0x1d8] sm:$0xff] }
  0xc5   :  { %1612 = vmatpush1.bf16.msra.mxu0 %v3666_v11  ;;  %1951 = vmatpush1.bf16.msra.mxu1 %v3669_v12  ;;  %v83_v11 = vld [vmem:[%s4358_s0 + $0x140] sm:$0xff]  ;;  %v89_v12 = vld [vmem:[%s4358_s0 + $0x170] sm:$0xff] }
  0xc6   :  { %1613 = vmatprep.subr.bf16.mxu0 %v3674_v16  ;;  %1952 = vmatprep.subr.bf16.mxu1 %v3677_v17  ;;  %v3713_v16 = vld [vmem:[%s4361_s3 + $0xa8] sm:$0xff]   ;;  %v3714_v17 = vld [vmem:[%s4361_s3 + $0x70] sm:$0xff]  }
  0xc7   :  { %1576 = vmatprep.mubr.bf16.mxu0 %v184_v20  ;;  %1915 = vmatprep.mubr.bf16.mxu1 %v184_v20  ;;  %v168_v20 = vpack.c.bf16 %v102_v14, %v96_v13 }
  0xc9   :  { %1614 = vmatpush1.bf16.msra.mxu0 %v3672_v18  ;;  %1953 = vmatpush1.bf16.msra.mxu1 %v3675_v19  ;;  %v3716_v18 = vld [vmem:[%s4361_s3 + $0xf0] sm:$0xff]   ;;  %v161_v19 = vpack.c.bf16 %v89_v12, %v83_v11 }
  0xca   :  { %1615 = vmatprep.subr.bf16.mxu0 %v3680_v23  ;;  %1954 = vmatprep.subr.bf16.mxu1 %v3683_v24  ;;  %v95_v23 = vld [vmem:[%s4358_s0 + $0x1a0] sm:$0xff]  ;;  %v101_v24 = vld [vmem:[%s4358_s0 + $0x1d0] sm:$0xff] }
  0xcb   :  { %v167_v27 = vpack.c.bf16 %v101_v24, %v95_v23 }
  0xcc   :  { %1577 = vmatmul.mubr.bf16.gmra.mrb[28].mxu0 %v183_v28  ;;  %1916 = vmatmul.mubr.bf16.gmra.mrb[28].mxu1 %v183_v28 }
  0xcd   :  { %1616 = vmatpush1.bf16.msra.mxu0 %v3678_v25  ;;  %1955 = vmatpush1.bf16.msra.mxu1 %v3681_v26  ;;  %v108_v25 = vld [vmem:[%s4358_s0 + $0x208] sm:$0xff]  ;;  %v114_v26 = vld [vmem:[%s4358_s0 + $0x238] sm:$0xff] }
  0xce   :  { %1617 = vmatprep.subr.bf16.mxu0 %v3686_v30  ;;  %1956 = vmatprep.subr.bf16.mxu1 %v3689_v31  ;;  %v174_v28 = vpack.c.bf16 %v114_v26, %v108_v25  ;;  %v113_v30 = vld [vmem:[%s4358_s0 + $0x230] sm:$0xff]  ;;  %v120_v31 = vld [vmem:[%s4358_s0 + $0x268] sm:$0xff] }
  0xcf   :  { %1619 = vmatprep.mubr.bf16.mxu0 %v144_v34  ;;  %1958 = vmatprep.mubr.bf16.mxu1 %v144_v34 }
  0xd1   :  { %1618 = vmatpush1.bf16.msra.mxu0 %v3684_v32  ;;  %1957 = vmatpush1.bf16.msra.mxu1 %v3687_v33  ;;  %v126_v32 = vld [vmem:[%s4358_s0 + $0x298] sm:$0xff]  ;;  %v173_v33 = vpack.c.bf16 %v113_v30, %v107_v29 }
  0xd2   :  { %2991 = vmatprep.subr.bf16.mxu0 %v3690_v39  ;;  %3055 = vmatprep.subr.bf16.mxu1 %v3692_v40  ;;  %v180_v34 = vpack.c.bf16 %v126_v32, %v120_v31  ;;  %v179_v39 = vpack.c.bf16 %v125_v36, %v119_v35  ;;  %v186_v40 = vpack.c.bf16 %v138_v38, %v132_v37 }
  0xd4   :  { %1620 = vmatmul.mubr.bf16.vlgmr.msra.gmra.mrb[0].mxu0 %v143_v41  ;;  %1959 = vmatmul.mubr.bf16.vlgmr.msra.gmra.mrb[0].mxu1 %v143_v41  ;;  %v131_v41 = vld [vmem:[%s4358_s0 + $0x2c0] sm:$0xff] }
  0xd5   :  { %1629 = vmatprep.mubr.bf16.mxu0 %v150_v42  ;;  %1968 = vmatprep.mubr.bf16.mxu1 %v150_v42  ;;  %v137_v42 = vld [vmem:[%s4358_s0 + $0x2f0] sm:$0xff] }
  0xd6   :  { %2992 = vmatpush3.bf16.msra.mxu0 %v3691_v43  ;;  %3056 = vmatpush3.bf16.msra.mxu1 %v3693_v44  ;;  %v185_v43 = vpack.c.bf16 %v137_v42, %v131_v41  ;;  %v3718_v44 = vld [vmem:[%s4361_s3 + $0x78] sm:$0xff]  }
  0xd7   :  { %2993 = vmatprep.subr.bf16.mxu0 %v3694_v45  ;;  %3057 = vmatprep.subr.bf16.mxu1 %v3696_v46  ;;  %v3720_v45 = vld [vmem:[%s4361_s3 + $0xf8] sm:$0xff]  }
  0xd8   :  { %v3719_v46 = vld [vmem:[%s4361_s3 + $0x38] sm:$0xff]  }
  0xda   :  { %2994 = vmatpush3.bf16.msra.mxu0 %v3695_v51  ;;  %3058 = vmatpush3.bf16.msra.mxu1 %v3697_v52  ;;  %v391_v51 = vsub.s32 2, %v382_v49  ;;  %v379_v52 = vld [vmem:[%s4360_s2] sm:$0xf] }
  0xdb   :  { %2995 = vmatprep.subr.bf16.mxu0 %v3698_v53  ;;  %3059 = vmatprep.subr.bf16.mxu1 %v3700_v54  ;;  %v387_v53 = vsub.s32 1, %v382_v49  ;;  %v395_v54 = vsub.s32 3, %v382_v49 }
  0xdc   :  { %1630 = vmatmul.mubr.bf16.gmra.mrb[4].mxu0 %v149_v55  ;;  %1969 = vmatmul.mubr.bf16.gmra.mrb[4].mxu1 %v149_v55  ;;  %v4216_v55 = vrot.slane %v379_v52, %v383_v50 }
  0xdd   :  { %1639 = vmatprep.mubr.bf16.mxu0 %v156_v56  ;;  %1978 = vmatprep.mubr.bf16.mxu1 %v156_v56  ;;  %v4218_v56 = vrot.slane %v379_v52, %v391_v51 }
  0xde   :  { %2996 = vmatpush3.bf16.msra.mxu0 %v3699_v57  ;;  %3060 = vmatpush3.bf16.msra.mxu1 %v3701_v58  ;;  %v4220_v57 = vrot.slane %v379_v52, %v387_v53  ;;  %v4222_v58 = vrot.slane %v379_v52, %v395_v54 }
  0xdf   :  { %2997 = vmatprep.subr.bf16.mxu0 %v3702_v59  ;;  %3061 = vmatprep.subr.bf16.mxu1 %v3704_v60 }
  0xe2   :  { %2998 = vmatpush3.bf16.msra.mxu0 %v3703_v1  ;;  %3062 = vmatpush3.bf16.msra.mxu1 %v3705_v2 }
  0xe3   :  { %2999 = vmatprep.subr.bf16.mxu0 %v3706_v3  ;;  %3063 = vmatprep.subr.bf16.mxu1 %v3708_v4 }
  0xe4   :  { %1640 = vmatmul.mubr.bf16.gmra.mrb[8].mxu0 %v155_v5  ;;  %1979 = vmatmul.mubr.bf16.gmra.mrb[8].mxu1 %v155_v5 }
  0xe5   :  { %1649 = vmatprep.mubr.bf16.mxu0 %v162_v6  ;;  %1988 = vmatprep.mubr.bf16.mxu1 %v162_v6 }
  0xe6   :  { %3000 = vmatpush3.bf16.msra.mxu0 %v3707_v7  ;;  %3064 = vmatpush3.bf16.msra.mxu1 %v3709_v8 }
  0xe7   :  { %3001 = vmatprep.subr.bf16.mxu0 %v3710_v9  ;;  %3065 = vmatprep.subr.bf16.mxu1 %v3712_v10 }
  0xea   :  { %3002 = vmatpush3.bf16.msra.mxu0 %v3711_v15  ;;  %3066 = vmatpush3.bf16.msra.mxu1 %v3713_v16 }
  0xeb   :  { %3003 = vmatprep.subr.bf16.mxu0 %v3714_v17  ;;  %3067 = vmatprep.subr.bf16.mxu1 %v3716_v18 }
  0xec   :  { %1650 = vmatmul.mubr.bf16.gmra.mrb[12].mxu0 %v161_v19  ;;  %1989 = vmatmul.mubr.bf16.gmra.mrb[12].mxu1 %v161_v19 }
  0xed   :  { %1659 = vmatprep.mubr.bf16.mxu0 %v168_v20  ;;  %1998 = vmatprep.mubr.bf16.mxu1 %v168_v20 }
  0xee   :  { %3004 = vmatpush3.bf16.msra.mxu0 %v3715_v21  ;;  %3068 = vmatpush3.bf16.msra.mxu1 %v3717_v22 }
  0xef   :  { %3005 = vmatprep.subr.bf16.mxu0 %v3718_v44  ;;  %3069 = vmatprep.subr.bf16.mxu1 %v3720_v45 }
  0xf2   :  { %3006 = vmatpush3.bf16.msra.mxu0 %v3719_v46  ;;  %3070 = vmatpush3.bf16.msra.mxu1 %v3721_v47 }
  0xf4   :  { %1660 = vmatmul.mubr.bf16.gmra.mrb[16].mxu0 %v167_v27  ;;  %1999 = vmatmul.mubr.bf16.gmra.mrb[16].mxu1 %v167_v27 }
  0xf5   :  { %1669 = vmatprep.mubr.bf16.mxu0 %v174_v28  ;;  %2008 = vmatprep.mubr.bf16.mxu1 %v174_v28 }
  0xfc   :  { %1670 = vmatmul.mubr.bf16.gmra.mrb[20].mxu0 %v173_v33  ;;  %2009 = vmatmul.mubr.bf16.gmra.mrb[20].mxu1 %v173_v33 }
  0xfd   :  { %1679 = vmatprep.mubr.bf16.mxu0 %v180_v34  ;;  %2018 = vmatprep.mubr.bf16.mxu1 %v180_v34 }
 0x104   :  { %1680 = vmatmul.mubr.bf16.gmra.mrb[24].mxu0 %v179_v39  ;;  %2019 = vmatmul.mubr.bf16.gmra.mrb[24].mxu1 %v179_v39 }
 0x105   :  { %1689 = vmatprep.mubr.bf16.mxu0 %v186_v40  ;;  %2028 = vmatprep.mubr.bf16.mxu1 %v186_v40 }
 0x10c   :  { %1690 = vmatmul.mubr.bf16.gmra.mrb[28].mxu0 %v185_v43  ;;  %2029 = vmatmul.mubr.bf16.gmra.mrb[28].mxu1 %v185_v43 }
 0x1a7   :  { %v1621_v59 = vpop.f32.mrb[0].mxu0  ;;  %v1960_v60 = vpop.f32.mrb[0].mxu1 }
 0x1a8   :  { %v3203_v61 = vadd.f32 %v1621_v59, %v4216_v55  ;;  %v3235_v62 = vadd.f32 %v1960_v60, %v4218_v56  ;;  %v1623_v63 = vpop.f32.mrb[1].mxu0  ;;  %v1962_v0 = vpop.f32.mrb[1].mxu1 }
 0x1a9   :  { %v3204_v1 = vadd.f32 %v1623_v63, %v4220_v57  ;;  %v3236_v2 = vadd.f32 %v1962_v0, %v4222_v58  ;;  %v1625_v3 = vpop.f32.mrb[2].mxu0  ;;  %v1964_v4 = vpop.f32.mrb[2].mxu1 }
 0x1aa   :  { %v3205_v5 = vadd.f32 %v1625_v3, %v4216_v55  ;;  %v3237_v6 = vadd.f32 %v1964_v4, %v4218_v56  ;;  %v1627_v7 = vpop.f32.mrb[3].mxu0  ;;  %v1966_v8 = vpop.f32.mrb[3].mxu1  ;;  %v2039_v11 = vmax.f32 %v3203_v61, 0.0  ;;  %v2041_v12 = vmax.f32 %v3235_v62, 0.0 }
 0x1ab   :  { %v3206_v9 = vadd.f32 %v1627_v7, %v4220_v57  ;;  %v3238_v10 = vadd.f32 %v1966_v8, %v4222_v58  ;;  %v2040_v15 = vmax.f32 %v3204_v1, 0.0  ;;  %v2042_v16 = vmax.f32 %v3236_v2, 0.0 }
 0x1ac   :  { %v2043_v13 = vmax.f32 %v3205_v5, 0.0  ;;  %v2045_v14 = vmax.f32 %v3237_v6, 0.0 }
 0x1ad   :  { %v2044_v17 = vmax.f32 %v3206_v9, 0.0  ;;  %v2046_v18 = vmax.f32 %v3238_v10, 0.0 }
 0x1ae   :  { %v2103_v19 = vpack.c.bf16 %v2043_v13, %v2039_v11  ;;  %v2105_v20 = vpack.c.bf16 %v2045_v14, %v2041_v12 }
 0x1af   :  { %v2104_v21 = vpack.c.bf16 %v2044_v17, %v2040_v15  ;;  %v2106_v22 = vpack.c.bf16 %v2046_v18, %v2042_v16  ;;  %v1631_v23 = vpop.f32.mrb[4].mxu0  ;;  %v1970_v24 = vpop.f32.mrb[4].mxu1 }
 0x1b0   :  { %v3207_v25 = vadd.f32 %v1631_v23, %v4216_v55  ;;  %v3239_v26 = vadd.f32 %v1970_v24, %v4218_v56  ;;  %v1633_v27 = vpop.f32.mrb[5].mxu0  ;;  %v1972_v28 = vpop.f32.mrb[5].mxu1 }
 0x1b1   :  { %v3208_v29 = vadd.f32 %v1633_v27, %v4220_v57  ;;  %v3240_v30 = vadd.f32 %v1972_v28, %v4222_v58  ;;  %v1635_v31 = vpop.f32.mrb[6].mxu0  ;;  %v1974_v32 = vpop.f32.mrb[6].mxu1  ;;  %2430 = vmatprep.mubr.bf16.mxu0 %v2104_v21  ;;  %2527 = vmatprep.mubr.bf16.mxu1 %v2106_v22 }
 0x1b2   :  { %v3209_v33 = vadd.f32 %v1635_v31, %v4216_v55  ;;  %v3241_v34 = vadd.f32 %v1974_v32, %v4218_v56  ;;  %v1637_v35 = vpop.f32.mrb[7].mxu0  ;;  %v1976_v36 = vpop.f32.mrb[7].mxu1  ;;  %2431 = vmatmul.mubr.bf16.vlgmr.msra.gmra.mrb[32].mxu0 %v2103_v19  ;;  %2528 = vmatmul.mubr.bf16.vlgmr.msra.gmra.mrb[32].mxu1 %v2105_v20  ;;  %v2047_v39 = vmax.f32 %v3207_v25, 0.0  ;;  %v2049_v40 = vmax.f32 %v3239_v26, 0.0 }
 0x1b3   :  { %v3210_v37 = vadd.f32 %v1637_v35, %v4220_v57  ;;  %v3242_v38 = vadd.f32 %v1976_v36, %v4222_v58  ;;  %v2048_v43 = vmax.f32 %v3208_v29, 0.0  ;;  %v2050_v44 = vmax.f32 %v3240_v30, 0.0 }
 0x1b4   :  { %v2051_v41 = vmax.f32 %v3209_v33, 0.0  ;;  %v2053_v42 = vmax.f32 %v3241_v34, 0.0 }
 0x1b5   :  { %v2052_v45 = vmax.f32 %v3210_v37, 0.0  ;;  %v2054_v46 = vmax.f32 %v3242_v38, 0.0 }
 0x1b6   :  { %v2107_v47 = vpack.c.bf16 %v2051_v41, %v2047_v39  ;;  %v2109_v48 = vpack.c.bf16 %v2053_v42, %v2049_v40 }
 0x1b7   :  { %v2108_v49 = vpack.c.bf16 %v2052_v45, %v2048_v43  ;;  %v2110_v50 = vpack.c.bf16 %v2054_v46, %v2050_v44  ;;  %v1641_v51 = vpop.f32.mrb[8].mxu0  ;;  %v1980_v52 = vpop.f32.mrb[8].mxu1 }
 0x1b8   :  { %v3211_v53 = vadd.f32 %v1641_v51, %v4216_v55  ;;  %v3243_v54 = vadd.f32 %v1980_v52, %v4218_v56  ;;  %v1643_v59 = vpop.f32.mrb[9].mxu0  ;;  %v1982_v60 = vpop.f32.mrb[9].mxu1 }
 0x1b9   :  { %v3212_v61 = vadd.f32 %v1643_v59, %v4220_v57  ;;  %v3244_v62 = vadd.f32 %v1982_v60, %v4222_v58  ;;  %v1645_v63 = vpop.f32.mrb[10].mxu0  ;;  %v1984_v0 = vpop.f32.mrb[10].mxu1  ;;  %2438 = vmatprep.mubr.bf16.mxu0 %v2108_v49  ;;  %2535 = vmatprep.mubr.bf16.mxu1 %v2110_v50 }
 0x1ba   :  { %v3213_v1 = vadd.f32 %v1645_v63, %v4216_v55  ;;  %v3245_v2 = vadd.f32 %v1984_v0, %v4218_v56  ;;  %v1647_v3 = vpop.f32.mrb[11].mxu0  ;;  %v1986_v4 = vpop.f32.mrb[11].mxu1  ;;  %2439 = vmatmul.mubr.bf16.gmra.mrb[36].mxu0 %v2107_v47  ;;  %2536 = vmatmul.mubr.bf16.gmra.mrb[36].mxu1 %v2109_v48  ;;  %v2055_v7 = vmax.f32 %v3211_v53, 0.0  ;;  %v2057_v8 = vmax.f32 %v3243_v54, 0.0 }
 0x1bb   :  { %v3214_v5 = vadd.f32 %v1647_v3, %v4220_v57  ;;  %v3246_v6 = vadd.f32 %v1986_v4, %v4222_v58  ;;  %v2056_v11 = vmax.f32 %v3212_v61, 0.0  ;;  %v2058_v12 = vmax.f32 %v3244_v62, 0.0 }
 0x1bc   :  { %v2059_v9 = vmax.f32 %v3213_v1, 0.0  ;;  %v2061_v10 = vmax.f32 %v3245_v2, 0.0 }
 0x1bd   :  { %v2060_v13 = vmax.f32 %v3214_v5, 0.0  ;;  %v2062_v14 = vmax.f32 %v3246_v6, 0.0 }
 0x1be   :  { %v2111_v15 = vpack.c.bf16 %v2059_v9, %v2055_v7  ;;  %v2113_v16 = vpack.c.bf16 %v2061_v10, %v2057_v8 }
 0x1bf   :  { %v2112_v17 = vpack.c.bf16 %v2060_v13, %v2056_v11  ;;  %v2114_v18 = vpack.c.bf16 %v2062_v14, %v2058_v12  ;;  %v1651_v19 = vpop.f32.mrb[12].mxu0  ;;  %v1990_v20 = vpop.f32.mrb[12].mxu1 }
 0x1c0   :  { %v3215_v21 = vadd.f32 %v1651_v19, %v4216_v55  ;;  %v3247_v22 = vadd.f32 %v1990_v20, %v4218_v56  ;;  %v1653_v23 = vpop.f32.mrb[13].mxu0  ;;  %v1992_v24 = vpop.f32.mrb[13].mxu1 }
 0x1c1   :  { %v3216_v25 = vadd.f32 %v1653_v23, %v4220_v57  ;;  %v3248_v26 = vadd.f32 %v1992_v24, %v4222_v58  ;;  %v1655_v27 = vpop.f32.mrb[14].mxu0  ;;  %v1994_v28 = vpop.f32.mrb[14].mxu1  ;;  %2446 = vmatprep.mubr.bf16.mxu0 %v2112_v17  ;;  %2543 = vmatprep.mubr.bf16.mxu1 %v2114_v18 }
 0x1c2   :  { %v3217_v29 = vadd.f32 %v1655_v27, %v4216_v55  ;;  %v3249_v30 = vadd.f32 %v1994_v28, %v4218_v56  ;;  %v1657_v31 = vpop.f32.mrb[15].mxu0  ;;  %v1996_v32 = vpop.f32.mrb[15].mxu1  ;;  %2447 = vmatmul.mubr.bf16.gmra.mrb[40].mxu0 %v2111_v15  ;;  %2544 = vmatmul.mubr.bf16.gmra.mrb[40].mxu1 %v2113_v16  ;;  %v2063_v35 = vmax.f32 %v3215_v21, 0.0  ;;  %v2065_v36 = vmax.f32 %v3247_v22, 0.0 }
 0x1c3   :  { %v3218_v33 = vadd.f32 %v1657_v31, %v4220_v57  ;;  %v3250_v34 = vadd.f32 %v1996_v32, %v4222_v58  ;;  %v2064_v39 = vmax.f32 %v3216_v25, 0.0  ;;  %v2066_v40 = vmax.f32 %v3248_v26, 0.0 }
 0x1c4   :  { %v2067_v37 = vmax.f32 %v3217_v29, 0.0  ;;  %v2069_v38 = vmax.f32 %v3249_v30, 0.0 }
 0x1c5   :  { %v2068_v41 = vmax.f32 %v3218_v33, 0.0  ;;  %v2070_v42 = vmax.f32 %v3250_v34, 0.0 }
 0x1c6   :  { %v2115_v43 = vpack.c.bf16 %v2067_v37, %v2063_v35  ;;  %v2117_v44 = vpack.c.bf16 %v2069_v38, %v2065_v36 }
 0x1c7   :  { %v2116_v45 = vpack.c.bf16 %v2068_v41, %v2064_v39  ;;  %v2118_v46 = vpack.c.bf16 %v2070_v42, %v2066_v40  ;;  %v1661_v47 = vpop.f32.mrb[16].mxu0  ;;  %v2000_v48 = vpop.f32.mrb[16].mxu1 }
 0x1c8   :  { %v3219_v49 = vadd.f32 %v1661_v47, %v4216_v55  ;;  %v3251_v50 = vadd.f32 %v2000_v48, %v4218_v56  ;;  %v1663_v51 = vpop.f32.mrb[17].mxu0  ;;  %v2002_v52 = vpop.f32.mrb[17].mxu1 }
 0x1c9   :  { %v3220_v53 = vadd.f32 %v1663_v51, %v4220_v57  ;;  %v3252_v54 = vadd.f32 %v2002_v52, %v4222_v58  ;;  %v1665_v59 = vpop.f32.mrb[18].mxu0  ;;  %v2004_v60 = vpop.f32.mrb[18].mxu1  ;;  %2454 = vmatprep.mubr.bf16.mxu0 %v2116_v45  ;;  %2551 = vmatprep.mubr.bf16.mxu1 %v2118_v46 }
 0x1ca   :  { %v3221_v61 = vadd.f32 %v1665_v59, %v4216_v55  ;;  %v3253_v62 = vadd.f32 %v2004_v60, %v4218_v56  ;;  %v1667_v63 = vpop.f32.mrb[19].mxu0  ;;  %v2006_v0 = vpop.f32.mrb[19].mxu1  ;;  %2455 = vmatmul.mubr.bf16.gmra.mrb[44].mxu0 %v2115_v43  ;;  %2552 = vmatmul.mubr.bf16.gmra.mrb[44].mxu1 %v2117_v44  ;;  %v2071_v3 = vmax.f32 %v3219_v49, 0.0  ;;  %v2073_v4 = vmax.f32 %v3251_v50, 0.0 }
 0x1cb   :  { %v3222_v1 = vadd.f32 %v1667_v63, %v4220_v57  ;;  %v3254_v2 = vadd.f32 %v2006_v0, %v4222_v58  ;;  %v2072_v7 = vmax.f32 %v3220_v53, 0.0  ;;  %v2074_v8 = vmax.f32 %v3252_v54, 0.0 }
 0x1cc   :  { %v2075_v5 = vmax.f32 %v3221_v61, 0.0  ;;  %v2077_v6 = vmax.f32 %v3253_v62, 0.0 }
 0x1cd   :  { %v2076_v9 = vmax.f32 %v3222_v1, 0.0  ;;  %v2078_v10 = vmax.f32 %v3254_v2, 0.0 }
 0x1ce   :  { %v2119_v11 = vpack.c.bf16 %v2075_v5, %v2071_v3  ;;  %v2121_v12 = vpack.c.bf16 %v2077_v6, %v2073_v4 }
 0x1cf   :  { %v2120_v13 = vpack.c.bf16 %v2076_v9, %v2072_v7  ;;  %v2122_v14 = vpack.c.bf16 %v2078_v10, %v2074_v8  ;;  %v1671_v15 = vpop.f32.mrb[20].mxu0  ;;  %v2010_v16 = vpop.f32.mrb[20].mxu1 }
 0x1d0   :  { %v3223_v17 = vadd.f32 %v1671_v15, %v4216_v55  ;;  %v3255_v18 = vadd.f32 %v2010_v16, %v4218_v56  ;;  %v1673_v19 = vpop.f32.mrb[21].mxu0  ;;  %v2012_v20 = vpop.f32.mrb[21].mxu1 }
 0x1d1   :  { %v3224_v21 = vadd.f32 %v1673_v19, %v4220_v57  ;;  %v3256_v22 = vadd.f32 %v2012_v20, %v4222_v58  ;;  %v1675_v23 = vpop.f32.mrb[22].mxu0  ;;  %v2014_v24 = vpop.f32.mrb[22].mxu1  ;;  %2462 = vmatprep.mubr.bf16.mxu0 %v2120_v13  ;;  %2559 = vmatprep.mubr.bf16.mxu1 %v2122_v14 }
 0x1d2   :  { %v3225_v25 = vadd.f32 %v1675_v23, %v4216_v55  ;;  %v3257_v26 = vadd.f32 %v2014_v24, %v4218_v56  ;;  %v1677_v27 = vpop.f32.mrb[23].mxu0  ;;  %v2016_v28 = vpop.f32.mrb[23].mxu1  ;;  %2463 = vmatmul.mubr.bf16.gmra.mrb[48].mxu0 %v2119_v11  ;;  %2560 = vmatmul.mubr.bf16.gmra.mrb[48].mxu1 %v2121_v12  ;;  %v2079_v31 = vmax.f32 %v3223_v17, 0.0  ;;  %v2081_v32 = vmax.f32 %v3255_v18, 0.0 }
 0x1d3   :  { %v3226_v29 = vadd.f32 %v1677_v27, %v4220_v57  ;;  %v3258_v30 = vadd.f32 %v2016_v28, %v4222_v58  ;;  %v2080_v35 = vmax.f32 %v3224_v21, 0.0  ;;  %v2082_v36 = vmax.f32 %v3256_v22, 0.0 }
 0x1d4   :  { %v2083_v33 = vmax.f32 %v3225_v25, 0.0  ;;  %v2085_v34 = vmax.f32 %v3257_v26, 0.0 }
 0x1d5   :  { %v2084_v37 = vmax.f32 %v3226_v29, 0.0  ;;  %v2086_v38 = vmax.f32 %v3258_v30, 0.0 }
 0x1d6   :  { %v2123_v39 = vpack.c.bf16 %v2083_v33, %v2079_v31  ;;  %v2125_v40 = vpack.c.bf16 %v2085_v34, %v2081_v32 }
 0x1d7   :  { %v2124_v41 = vpack.c.bf16 %v2084_v37, %v2080_v35  ;;  %v2126_v42 = vpack.c.bf16 %v2086_v38, %v2082_v36  ;;  %v1681_v43 = vpop.f32.mrb[24].mxu0  ;;  %v2020_v44 = vpop.f32.mrb[24].mxu1  ;;  %v3773_v37 = vmov 0.0|0.0  }
 0x1d8   :  { %v3227_v45 = vadd.f32 %v1681_v43, %v4216_v55  ;;  %v3259_v46 = vadd.f32 %v2020_v44, %v4218_v56  ;;  %v1683_v47 = vpop.f32.mrb[25].mxu0  ;;  %v2022_v48 = vpop.f32.mrb[25].mxu1  ;;  %3171 = vmatprep.subr.bf16.mxu0 %v3773_v37 }
 0x1d9   :  { %v3228_v49 = vadd.f32 %v1683_v47, %v4220_v57  ;;  %v3260_v50 = vadd.f32 %v2022_v48, %v4222_v58  ;;  %v1685_v51 = vpop.f32.mrb[26].mxu0  ;;  %v2024_v52 = vpop.f32.mrb[26].mxu1  ;;  %2470 = vmatprep.mubr.bf16.mxu0 %v2124_v41  ;;  %2567 = vmatprep.mubr.bf16.mxu1 %v2126_v42 }
 0x1da   :  { %v3229_v53 = vadd.f32 %v1685_v51, %v4216_v55  ;;  %v3261_v54 = vadd.f32 %v2024_v52, %v4218_v56  ;;  %v1687_v59 = vpop.f32.mrb[27].mxu0  ;;  %v2026_v60 = vpop.f32.mrb[27].mxu1  ;;  %2471 = vmatmul.mubr.bf16.gmra.mrb[52].mxu0 %v2123_v39  ;;  %2568 = vmatmul.mubr.bf16.gmra.mrb[52].mxu1 %v2125_v40  ;;  %v2087_v63 = vmax.f32 %v3227_v45, 0.0  ;;  %v2089_v0 = vmax.f32 %v3259_v46, 0.0  ;;  %v4292_v39 = vld [vmem:[%s4362_s4] ss:$0 sm:$0xff] }
 0x1db   :  { %v3230_v61 = vadd.f32 %v1687_v59, %v4220_v57  ;;  %v3262_v62 = vadd.f32 %v2026_v60, %v4222_v58  ;;  %v2088_v3 = vmax.f32 %v3228_v49, 0.0  ;;  %v2090_v4 = vmax.f32 %v3260_v50, 0.0 }
 0x1dc   :  { %v2091_v1 = vmax.f32 %v3229_v53, 0.0  ;;  %v2093_v2 = vmax.f32 %v3261_v54, 0.0 }
 0x1dd   :  { %v2092_v5 = vmax.f32 %v3230_v61, 0.0  ;;  %v2094_v6 = vmax.f32 %v3262_v62, 0.0 }
 0x1de   :  { %v2127_v7 = vpack.c.bf16 %v2091_v1, %v2087_v63  ;;  %v2129_v8 = vpack.c.bf16 %v2093_v2, %v2089_v0 }
 0x1df   :  { %v2128_v9 = vpack.c.bf16 %v2092_v5, %v2088_v3  ;;  %v2130_v10 = vpack.c.bf16 %v2094_v6, %v2090_v4  ;;  %v1691_v11 = vpop.f32.mrb[28].mxu0  ;;  %v2030_v12 = vpop.f32.mrb[28].mxu1 }
 0x1e0   :  { %v3231_v13 = vadd.f32 %v1691_v11, %v4216_v55  ;;  %v3263_v14 = vadd.f32 %v2030_v12, %v4218_v56  ;;  %v1693_v15 = vpop.f32.mrb[29].mxu0  ;;  %v2032_v16 = vpop.f32.mrb[29].mxu1 }
 0x1e1   :  { %v3232_v17 = vadd.f32 %v1693_v15, %v4220_v57  ;;  %v3264_v18 = vadd.f32 %v2032_v16, %v4222_v58  ;;  %v1695_v19 = vpop.f32.mrb[30].mxu0  ;;  %v2034_v20 = vpop.f32.mrb[30].mxu1  ;;  %2478 = vmatprep.mubr.bf16.mxu0 %v2128_v9  ;;  %2575 = vmatprep.mubr.bf16.mxu1 %v2130_v10 }
 0x1e2   :  { %v3233_v21 = vadd.f32 %v1695_v19, %v4216_v55  ;;  %v3265_v22 = vadd.f32 %v2034_v20, %v4218_v56  ;;  %v1697_v23 = vpop.f32.mrb[31].mxu0  ;;  %v2036_v24 = vpop.f32.mrb[31].mxu1  ;;  %2479 = vmatmul.mubr.bf16.gmra.mrb[56].mxu0 %v2127_v7  ;;  %2576 = vmatmul.mubr.bf16.gmra.mrb[56].mxu1 %v2129_v8  ;;  %v2095_v27 = vmax.f32 %v3231_v13, 0.0  ;;  %v2097_v28 = vmax.f32 %v3263_v14, 0.0 }
 0x1e3   :  { %v3234_v25 = vadd.f32 %v1697_v23, %v4220_v57  ;;  %v3266_v26 = vadd.f32 %v2036_v24, %v4222_v58  ;;  %v2096_v31 = vmax.f32 %v3232_v17, 0.0  ;;  %v2098_v32 = vmax.f32 %v3264_v18, 0.0 }
 0x1e4   :  { %v2099_v29 = vmax.f32 %v3233_v21, 0.0  ;;  %v2101_v30 = vmax.f32 %v3265_v22, 0.0  ;;  %v3775_v57 = vmov 0.0  }
 0x1e5   :  { %v2100_v33 = vmax.f32 %v3234_v25, 0.0  ;;  %v2102_v34 = vmax.f32 %v3266_v26, 0.0 }
 0x1e6   :  { %v2131_v35 = vpack.c.bf16 %v2099_v29, %v2095_v27  ;;  %v2133_v55 = vpack.c.bf16 %v2101_v30, %v2097_v28 }
 0x1e7   :  { %v2132_v36 = vpack.c.bf16 %v2100_v33, %v2096_v31  ;;  %v2134_v56 = vpack.c.bf16 %v2102_v34, %v2098_v32 }
 0x1e9   :  { %2486 = vmatprep.mubr.bf16.mxu0 %v2132_v36  ;;  %2583 = vmatprep.mubr.bf16.mxu1 %v2134_v56 }
 0x1ea   :  { %2487 = vmatmul.mubr.bf16.gmra.mrb[60].mxu0 %v2131_v35  ;;  %2584 = vmatmul.mubr.bf16.gmra.mrb[60].mxu1 %v2133_v55 }
 0x1eb   :  { %3168 = vmatprep.mubr.msk.f32.mxu0 %vm3774_vm0, %v3775_v57 }
 0x285   :  { %v3007_v58 = vpop.f32.mrb[32].mxu0  ;;  %v3071_v38 = vpop.f32.mrb[32].mxu1 }
 0x286   :  { %v3008_v40 = vpop.f32.mrb[33].mxu0  ;;  %v3072_v41 = vpop.f32.mrb[33].mxu1 }
 0x287   :  { %v3009_v42 = vadd.f32 %v3008_v40, %v3007_v58  ;;  %v3073_v43 = vadd.f32 %v3072_v41, %v3071_v38  ;;  %v3010_v44 = vpop.f32.mrb[34].mxu0  ;;  %v3074_v45 = vpop.f32.mrb[34].mxu1 }
 0x288   :  { %v3011_v46 = vpop.f32.mrb[35].mxu0  ;;  %v3075_v47 = vpop.f32.mrb[35].mxu1 }
 0x289   :  { %v2433_v48 = vadd.f32 %v3009_v42, %v4292_v39  ;;  %v3012_v49 = vadd.f32 %v3011_v46, %v3010_v44  ;;  %v3076_v50 = vadd.f32 %v3075_v47, %v3074_v45 }
 0x28b   :  { %v2530_v51 = vadd.f32 %v3073_v43, %v2433_v48  ;;  %v2436_v52 = vadd.f32 %v3012_v49, %v4292_v39 }
 0x28d   :  { %v2533_v53 = vadd.f32 %v3076_v50, %v2436_v52  ;;  %v3013_v54 = vpop.f32.mrb[36].mxu0  ;;  %v3077_v59 = vpop.f32.mrb[36].mxu1  ;;  %v2592_v62 = vmax.f32 %v2530_v51, 0.0 }
 0x28e   :  { %v3014_v60 = vpop.f32.mrb[37].mxu0  ;;  %v3078_v61 = vpop.f32.mrb[37].mxu1 }
 0x28f   :  { %v2593_v63 = vmax.f32 %v2533_v53, 0.0  ;;  %v3015_v0 = vadd.f32 %v3014_v60, %v3013_v54  ;;  %v3079_v1 = vadd.f32 %v3078_v61, %v3077_v59  ;;  %v3016_v2 = vpop.f32.mrb[38].mxu0  ;;  %v3080_v3 = vpop.f32.mrb[38].mxu1 }
 0x290   :  { %v3017_v4 = vpop.f32.mrb[39].mxu0  ;;  %v3081_v5 = vpop.f32.mrb[39].mxu1 }
 0x291   :  { %v3172_v7 = vpack.c.bf16 %v2593_v63, %v2592_v62  ;;  %v2441_v8 = vadd.f32 %v3015_v0, %v4292_v39  ;;  %v3018_v9 = vadd.f32 %v3017_v4, %v3016_v2  ;;  %v3082_v10 = vadd.f32 %v3081_v5, %v3080_v3 }
 0x293   :  { %v2538_v11 = vadd.f32 %v3079_v1, %v2441_v8  ;;  %v2444_v12 = vadd.f32 %v3018_v9, %v4292_v39  ;;  %3174 = vmatpush3.bf16.xpose.msk.msra.mxu0 %vm4298_vm2, %v3172_v7 }
 0x294   :  { %3175 = vmatprep.subr.bf16.mxu0 %v3773_v37 }
 0x295   :  { %v2541_v13 = vadd.f32 %v3082_v10, %v2444_v12  ;;  %v3019_v14 = vpop.f32.mrb[40].mxu0  ;;  %v3083_v15 = vpop.f32.mrb[40].mxu1  ;;  %v2594_v18 = vmax.f32 %v2538_v11, 0.0 }
 0x296   :  { %v3020_v16 = vpop.f32.mrb[41].mxu0  ;;  %v3084_v17 = vpop.f32.mrb[41].mxu1 }
 0x297   :  { %v2595_v19 = vmax.f32 %v2541_v13, 0.0  ;;  %v3021_v20 = vadd.f32 %v3020_v16, %v3019_v14  ;;  %v3085_v21 = vadd.f32 %v3084_v17, %v3083_v15  ;;  %v3022_v22 = vpop.f32.mrb[42].mxu0  ;;  %v3086_v23 = vpop.f32.mrb[42].mxu1 }
 0x298   :  { %v3023_v24 = vpop.f32.mrb[43].mxu0  ;;  %v3087_v25 = vpop.f32.mrb[43].mxu1 }
 0x299   :  { %v3176_v26 = vpack.c.bf16 %v2595_v19, %v2594_v18  ;;  %v2449_v27 = vadd.f32 %v3021_v20, %v4292_v39  ;;  %v3024_v28 = vadd.f32 %v3023_v24, %v3022_v22  ;;  %v3088_v29 = vadd.f32 %v3087_v25, %v3086_v23 }
 0x29b   :  { %v2546_v30 = vadd.f32 %v3085_v21, %v2449_v27  ;;  %v2452_v31 = vadd.f32 %v3024_v28, %v4292_v39  ;;  %3178 = vmatpush3.bf16.xpose.msk.msra.mxu0 %vm4298_vm2, %v3176_v26 }
 0x29c   :  { %3179 = vmatprep.subr.bf16.mxu0 %v3773_v37 }
 0x29d   :  { %v2549_v32 = vadd.f32 %v3088_v29, %v2452_v31  ;;  %v3025_v33 = vpop.f32.mrb[44].mxu0  ;;  %v3089_v34 = vpop.f32.mrb[44].mxu1  ;;  %v2596_v36 = vmax.f32 %v2546_v30, 0.0 }
 0x29e   :  { %v3026_v35 = vpop.f32.mrb[45].mxu0  ;;  %v3090_v55 = vpop.f32.mrb[45].mxu1 }
 0x29f   :  { %v2597_v56 = vmax.f32 %v2549_v32, 0.0  ;;  %v3027_v57 = vadd.f32 %v3026_v35, %v3025_v33  ;;  %v3091_v58 = vadd.f32 %v3090_v55, %v3089_v34  ;;  %v3028_v38 = vpop.f32.mrb[46].mxu0  ;;  %v3092_v40 = vpop.f32.mrb[46].mxu1 }
 0x2a0   :  { %v3029_v41 = vpop.f32.mrb[47].mxu0  ;;  %v3093_v42 = vpop.f32.mrb[47].mxu1 }
 0x2a1   :  { %v3180_v43 = vpack.c.bf16 %v2597_v56, %v2596_v36  ;;  %v2457_v44 = vadd.f32 %v3027_v57, %v4292_v39  ;;  %v3030_v45 = vadd.f32 %v3029_v41, %v3028_v38  ;;  %v3094_v46 = vadd.f32 %v3093_v42, %v3092_v40 }
 0x2a3   :  { %v2554_v47 = vadd.f32 %v3091_v58, %v2457_v44  ;;  %v2460_v48 = vadd.f32 %v3030_v45, %v4292_v39  ;;  %3182 = vmatpush3.bf16.xpose.msk.msra.mxu0 %vm4298_vm2, %v3180_v43 }
 0x2a4   :  { %3183 = vmatprep.subr.bf16.mxu0 %v3773_v37 }
 0x2a5   :  { %v2557_v49 = vadd.f32 %v3094_v46, %v2460_v48  ;;  %v3031_v50 = vpop.f32.mrb[48].mxu0  ;;  %v3095_v51 = vpop.f32.mrb[48].mxu1  ;;  %v2598_v54 = vmax.f32 %v2554_v47, 0.0 }
 0x2a6   :  { %v3032_v52 = vpop.f32.mrb[49].mxu0  ;;  %v3096_v53 = vpop.f32.mrb[49].mxu1 }
 0x2a7   :  { %v2599_v59 = vmax.f32 %v2557_v49, 0.0  ;;  %v3033_v60 = vadd.f32 %v3032_v52, %v3031_v50  ;;  %v3097_v61 = vadd.f32 %v3096_v53, %v3095_v51  ;;  %v3034_v62 = vpop.f32.mrb[50].mxu0  ;;  %v3098_v63 = vpop.f32.mrb[50].mxu1 }
 0x2a8   :  { %v3035_v0 = vpop.f32.mrb[51].mxu0  ;;  %v3099_v1 = vpop.f32.mrb[51].mxu1 }
 0x2a9   :  { %v3184_v2 = vpack.c.bf16 %v2599_v59, %v2598_v54  ;;  %v2465_v3 = vadd.f32 %v3033_v60, %v4292_v39  ;;  %v3036_v4 = vadd.f32 %v3035_v0, %v3034_v62  ;;  %v3100_v5 = vadd.f32 %v3099_v1, %v3098_v63 }
 0x2ab   :  { %v2562_v7 = vadd.f32 %v3097_v61, %v2465_v3  ;;  %v2468_v8 = vadd.f32 %v3036_v4, %v4292_v39  ;;  %3186 = vmatpush3.bf16.xpose.msk.msra.mxu0 %vm4298_vm2, %v3184_v2 }
 0x2ac   :  { %3187 = vmatprep.subr.bf16.mxu0 %v3773_v37 }
 0x2ad   :  { %v2565_v9 = vadd.f32 %v3100_v5, %v2468_v8  ;;  %v3037_v10 = vpop.f32.mrb[52].mxu0  ;;  %v3101_v11 = vpop.f32.mrb[52].mxu1  ;;  %v2600_v14 = vmax.f32 %v2562_v7, 0.0 }
 0x2ae   :  { %v3038_v12 = vpop.f32.mrb[53].mxu0  ;;  %v3102_v13 = vpop.f32.mrb[53].mxu1 }
 0x2af   :  { %v2601_v15 = vmax.f32 %v2565_v9, 0.0  ;;  %v3039_v16 = vadd.f32 %v3038_v12, %v3037_v10  ;;  %v3103_v17 = vadd.f32 %v3102_v13, %v3101_v11  ;;  %v3040_v18 = vpop.f32.mrb[54].mxu0  ;;  %v3104_v19 = vpop.f32.mrb[54].mxu1  ;;  %v2608_v9 = vld [vmem:[%s4363_s5] sm:$0x1] }
 0x2b0   :  { %v3041_v20 = vpop.f32.mrb[55].mxu0  ;;  %v3105_v21 = vpop.f32.mrb[55].mxu1 }
 0x2b1   :  { %v3188_v22 = vpack.c.bf16 %v2601_v15, %v2600_v14  ;;  %v2473_v23 = vadd.f32 %v3039_v16, %v4292_v39  ;;  %v3042_v24 = vadd.f32 %v3041_v20, %v3040_v18  ;;  %v3106_v25 = vadd.f32 %v3105_v21, %v3104_v19 }
 0x2b3   :  { %v2570_v26 = vadd.f32 %v3103_v17, %v2473_v23  ;;  %v2476_v27 = vadd.f32 %v3042_v24, %v4292_v39  ;;  %3190 = vmatpush3.bf16.xpose.msk.msra.mxu0 %vm4298_vm2, %v3188_v22 }
 0x2b4   :  { %3191 = vmatprep.subr.bf16.mxu0 %v3773_v37 }
 0x2b5   :  { %v2573_v28 = vadd.f32 %v3106_v25, %v2476_v27  ;;  %v3043_v29 = vpop.f32.mrb[56].mxu0  ;;  %v3107_v30 = vpop.f32.mrb[56].mxu1  ;;  %v2602_v33 = vmax.f32 %v2570_v26, 0.0 }
 0x2b6   :  { %v3044_v31 = vpop.f32.mrb[57].mxu0  ;;  %v3108_v32 = vpop.f32.mrb[57].mxu1 }
 0x2b7   :  { %v2603_v34 = vmax.f32 %v2573_v28, 0.0  ;;  %v3045_v35 = vadd.f32 %v3044_v31, %v3043_v29  ;;  %v3109_v55 = vadd.f32 %v3108_v32, %v3107_v30  ;;  %v3046_v36 = vpop.f32.mrb[58].mxu0  ;;  %v3110_v56 = vpop.f32.mrb[58].mxu1 }
 0x2b8   :  { %v3047_v57 = vpop.f32.mrb[59].mxu0  ;;  %v3111_v58 = vpop.f32.mrb[59].mxu1 }
 0x2b9   :  { %v3192_v38 = vpack.c.bf16 %v2603_v34, %v2602_v33  ;;  %v2481_v40 = vadd.f32 %v3045_v35, %v4292_v39  ;;  %v3048_v41 = vadd.f32 %v3047_v57, %v3046_v36  ;;  %v3112_v42 = vadd.f32 %v3111_v58, %v3110_v56 }
 0x2bb   :  { %v2578_v43 = vadd.f32 %v3109_v55, %v2481_v40  ;;  %v2484_v44 = vadd.f32 %v3048_v41, %v4292_v39  ;;  %3194 = vmatpush3.bf16.xpose.msk.msra.mxu0 %vm4298_vm2, %v3192_v38 }
 0x2bc   :  { %3195 = vmatprep.subr.bf16.mxu0 %v3773_v37 }
 0x2bd   :  { %v2581_v45 = vadd.f32 %v3112_v42, %v2484_v44  ;;  %v3049_v46 = vpop.f32.mrb[60].mxu0  ;;  %v3113_v47 = vpop.f32.mrb[60].mxu1  ;;  %v2604_v50 = vmax.f32 %v2578_v43, 0.0 }
 0x2be   :  { %v3050_v48 = vpop.f32.mrb[61].mxu0  ;;  %v3114_v49 = vpop.f32.mrb[61].mxu1 }
 0x2bf   :  { %v2605_v51 = vmax.f32 %v2581_v45, 0.0  ;;  %v3051_v52 = vadd.f32 %v3050_v48, %v3049_v46  ;;  %v3115_v53 = vadd.f32 %v3114_v49, %v3113_v47  ;;  %v3052_v54 = vpop.f32.mrb[62].mxu0  ;;  %v3116_v59 = vpop.f32.mrb[62].mxu1 }
 0x2c0   :  { %v3053_v60 = vpop.f32.mrb[63].mxu0  ;;  %v3117_v61 = vpop.f32.mrb[63].mxu1 }
 0x2c1   :  { %v3196_v62 = vpack.c.bf16 %v2605_v51, %v2604_v50  ;;  %v2489_v63 = vadd.f32 %v3051_v52, %v4292_v39  ;;  %v3054_v0 = vadd.f32 %v3053_v60, %v3052_v54  ;;  %v3118_v1 = vadd.f32 %v3117_v61, %v3116_v59 }
 0x2c3   :  { %v2586_v2 = vadd.f32 %v3115_v53, %v2489_v63  ;;  %v2492_v3 = vadd.f32 %v3054_v0, %v4292_v39  ;;  %3198 = vmatpush3.bf16.xpose.msk.msra.mxu0 %vm4298_vm2, %v3196_v62  ;;  %v2610_v39 = vstv %s4364_s6 }
 0x2c4   :  { %3199 = vmatprep.subr.bf16.mxu0 %v3773_v37 }
 0x2c5   :  { %v2589_v4 = vadd.f32 %v3118_v1, %v2492_v3  ;;  %v2606_v5 = vmax.f32 %v2586_v2, 0.0 }
 0x2c7   :  { %v2607_v7 = vmax.f32 %v2589_v4, 0.0 }
 0x2c9   :  { %v3200_v8 = vpack.c.bf16 %v2607_v7, %v2606_v5 }
 0x2cb   :  { %3202 = vmatpush3.bf16.xpose.msk.msra.mxu0 %vm4298_vm2, %v3200_v8 }
 0x2d2   :  { %3169 = vmatmul.mubr.msk.f32.vlgmr.msra.gmra.mrb[64].mxu0 %vm2611_vm1, %v2608_v9 }
 0x3a5   :  { %v2729_v37 = vpop.f32.mrb[64].mxu0 }
 0x3a6   :  { %v2730_v10 = vadd.f32 %v2729_v37, %v2610_v39  ;;  %v3170_v11 = vpop.f32.mrb[65].mxu0 }
 0x3a8   :  { %2733 = vst [vmem:[#allocation6] sm:$0x1] %v2730_v10 }
 0x3a9   :  { %3755 = shalt.err (!%p3752_p12)
}
 0x3aa   :  { %s3756_s15 = scalar_lea.hbm %s4365_s7, 16 }
 0x3ab   :  { %p3757_p13 = scmp.ne.s32.totalorder %s4365_s7, %s3756_s15  ;;  %p3760_p0 = scmp.lt.u32.totalorder %s3756_s15, %s4365_s7 }
 0x3ad   :  { %p3762_p1 = pnand %p3760_p0, %p3757_p13 }
 0x3af   :  { %3765 = shalt.err (!%p3762_p1)
}
 0x3b0   :  { %2743 = dma.vmem_to_hbm [thread:$0]  %s2741_s12, 16, %s4365_s7, [#allocation5]  }
 0x3b1   :  { %3768 = dma.done.wait [#allocation5], 16  }
 0x3b2   :  { %3769 = vsyncadd [#allocation5], 4294967280 }
 0x3b3   :  { %2747 = vsyncpa [#allocation4], 1 }
 0x3b4   :  { %2748 = vsyncpa [#allocation5], 1 }

</bundles_post_ra>
